<compile_context>
chip_gen: v7x
topology: tpu7x:2x2x1
jax: 0.10.0
libtpu: 0.0.40
codegen_flags: <defaults>
</compile_context>

<pallas_src>
import numpy as np
import jax
import jax.numpy as jnp
from jax.experimental import pallas as pl
from jax.experimental.pallas import tpu as pltpu

# TODO(synk): `N_layers` is an undefined global in the source blog script; fixed to 1 here.
N_LAYERS = 1
N_WIRES = 4

# Row offsets inside the packed, lane-pre-broadcast constant block (all multiples of 8).
_OFF_W1, _OFF_B1 = 0, 32
_OFF_W2, _OFF_B2 = 40, 104
_OFF_W3, _OFF_B3 = 112, 176
_OFF_SGA, _OFF_SGB = 184, 208
_CONST_ROWS = 240


def _sign_tables():
    """Signs over the 8 representative basis states (bit3 = 0, i.e. s3 = +1).

    sgA: (8, 3) columns s0, s1, s2 (coefficients of d0, d1, d2; d3 has coefficient +1).
    sgB: (8, 4) columns s0*s1, s1*s2, s2, s0 (coefficients of the ring ZZ terms e0..e3).
    """
    z = np.arange(8)
    s = 1.0 - 2.0 * ((z[:, None] >> np.arange(3)[None, :]) & 1)
    sgB = np.stack([s[:, 0] * s[:, 1], s[:, 1] * s[:, 2], s[:, 2], s[:, 0]], axis=1)
    return s.astype(np.float32), sgB.astype(np.float32)


def _pack_const_vec(params):
    """(240,) f32: MLP weight columns / biases / quantum sign columns in 8-row groups."""
    w1, b1, w2, b2, w3, b3 = (jnp.asarray(params[k], jnp.float32)
                              for k in ("w1", "b1", "w2", "b2", "w3", "b3"))
    sgA, sgB = _sign_tables()
    z4 = jnp.zeros((4,), jnp.float32)
    pieces = [w1[:, i] for i in range(4)] + [b1[:, 0]]
    pieces += [w2[:, i] for i in range(8)] + [b2[:, 0]]
    pieces += [jnp.concatenate([w3[:, i], z4]) for i in range(8)]      # pad 4 -> 8 rows
    pieces += [jnp.concatenate([b3[:, 0], z4])]
    pieces += [jnp.asarray(sgA[:, i]) for i in range(3)]
    pieces += [jnp.asarray(sgB[:, i]) for i in range(4)]
    return jnp.concatenate(pieces)                                     # (240,)


def fidelity_kernel(x1_ref, x2_ref, c_ref, out_ref):
    # x refs: (4, TB) batch-on-lanes; c_ref: (240, TB) lane-pre-broadcast constants.
    def slab(off):                       # (8, TB) constant slab, no runtime lane-broadcast
        return c_ref[off:off + 8, :]

    def linear(w_off, b_off, n_in, x):
        # (8, TB) = sum_i wcol_i * x[i, :] + b  — unrolled VPU FMAs (activations broadcast
        # along sublanes only; weight/bias slabs already lane-wide).
        acc = slab(w_off) * x[0:1, :] + slab(b_off)
        for i in range(1, n_in):
            acc = acc + slab(w_off + 8 * i) * x[i:i + 1, :]
        return acc

    def mlp(x):
        h = jnp.maximum(linear(_OFF_W1, _OFF_B1, 4, x), 0.0)
        h = jnp.maximum(linear(_OFF_W2, _OFF_B2, 8, h), 0.0)
        return linear(_OFF_W3, _OFF_B3, 8, h)        # rows 0..3 valid, rows 4..7 exactly 0

    a = mlp(x1_ref[...])                             # (8, TB) embedding angles (rows 0..3)
    b = mlp(x2_ref[...])                             # (8, TB) adjoint-embedding angles

    pi = jnp.float32(np.pi)
    d = a - b                                        # d_j = a_j - b_j
    qa = pi - a
    qb = pi - b

    def edge(j):                                     # e_j = (pi-a_j)(pi-a_{j+1}) - (pi-b_j)(pi-b_{j+1})
        k = (j + 1) % N_WIRES
        return qa[j:j + 1, :] * qa[k:k + 1, :] - qb[j:j + 1, :] * qb[k:k + 1, :]

    # |<0|U(b)^dag U(a)|0>|^2 = |(1/16) sum_z exp(i dphi(z))|^2 with dphi = A(z) + B(z);
    # under z <-> ~z, A flips sign and B is invariant, so the 16-state sum reduces to the
    # 8 representatives (bit3 = 0):  sr = (1/8) sum cosA*cosB,  si = (1/8) sum cosA*sinB.
    A = slab(_OFF_SGA) * d[0:1, :]
    A = A + slab(_OFF_SGA + 8) * d[1:2, :]
    A = A + slab(_OFF_SGA + 16) * d[2:3, :]
    A = A + d[3:4, :]
    B = slab(_OFF_SGB) * edge(0)
    B = B + slab(_OFF_SGB + 8) * edge(1)
    B = B + slab(_OFF_SGB + 16) * edge(2)
    B = B + slab(_OFF_SGB + 24) * edge(3)

    ca = jnp.cos(A)
    cb = jnp.cos(B)
    sb = jnp.sin(B)
    eighth = jnp.float32(0.125)
    sr = jnp.sum(ca * cb, axis=0, keepdims=True) * eighth      # (1, TB)
    si = jnp.sum(ca * sb, axis=0, keepdims=True) * eighth
    out_ref[...] = sr * sr + si * si                           # lane-dense store


def model_fidelity_forward(x1, x2, params, *, tb=None):
    """x1, x2: (B, 4) f32. params: w1(8,4) b1(8,1) w2(8,8) b2(8,1) w3(4,8) b3(4,1)."""
    if N_LAYERS != 1:
        raise NotImplementedError("closed-form kernel assumes N_layers == 1")
    B = x1.shape[0]
    if tb is None:
        # Largest lane tile (<=1024, multiple of 128) that still yields >=2 grid steps when
        # possible: both v7x TensorCores get work under dimension_semantics=("parallel",),
        # while big tiles amortize the ~600-cycle per-step overhead on v5e/v6e. Sweepable.
        tb = min(1024, max(128, ((B + 1) // 2 + 127) // 128 * 128))
    Bp = ((B + tb - 1) // tb) * tb
    pad = Bp - B

    x1t = jnp.transpose(jnp.asarray(x1, jnp.float32))          # (4, B)  batch -> lanes
    x2t = jnp.transpose(jnp.asarray(x2, jnp.float32))
    if pad:
        x1t = jnp.pad(x1t, ((0, 0), (0, pad)))
        x2t = jnp.pad(x2t, ((0, 0), (0, pad)))

    # Single packed constant operand, pre-broadcast to lane width (loaded once: constant
    # index_map => no re-DMA across grid steps; <=1 MB even at tb=1024).
    consts = jnp.broadcast_to(_pack_const_vec(params)[:, None], (_CONST_ROWS, tb))

    xspec = pl.BlockSpec((N_WIRES, tb), lambda i: (0, i))
    out = pl.pallas_call(
        fidelity_kernel,
        out_shape=jax.ShapeDtypeStruct((1, Bp), jnp.float32),
        grid_spec=pltpu.PrefetchScalarGridSpec(
            num_scalar_prefetch=0,
            grid=(Bp // tb,),
            in_specs=[xspec, xspec,
                      pl.BlockSpec((_CONST_ROWS, tb), lambda i: (0, 0))],
            out_specs=pl.BlockSpec((1, tb), lambda i: (0, i)),
        ),
        compiler_params=pltpu.CompilerParams(dimension_semantics=("parallel",)),
    )(x1t, x2t, consts)
    return out[0, :B]


# ---------------- pure NumPy reference (gate-by-gate statevector sim) ----------------
def reference_forward(x1, x2, params):
    w1, b1, w2, b2, w3, b3 = (np.asarray(params[k]) for k in ("w1", "b1", "w2", "b2", "w3", "b3"))

    def mlp(x):
        h = np.maximum(x @ w1.T + b1[:, 0], 0.0)
        h = np.maximum(h @ w2.T + b2[:, 0], 0.0)
        return h @ w3.T + b3[:, 0]

    a = mlp(np.asarray(x1))
    b = mlp(np.asarray(x2))

    H2 = np.array([[1, 1], [1, -1]], dtype=complex) / np.sqrt(2)
    I2 = np.eye(2, dtype=complex)

    def on_wire(U, w):
        ops = [I2] * 4
        ops[w] = U
        M = ops[0]
        for o in ops[1:]:
            M = np.kron(M, o)
        return M

    def rz(theta):
        return np.diag([np.exp(-1j * theta / 2), np.exp(1j * theta / 2)])

    def cnot(c, t):
        M = np.zeros((16, 16), complex)
        for z in range(16):
            bits = [(z >> (3 - w)) & 1 for w in range(4)]  # wire 0 = MSB (kron order)
            if bits[c]:
                bits[t] ^= 1
            z2 = sum(bit << (3 - w) for w, bit in enumerate(bits))
            M[z2, z] = 1.0
        return M

    def embedding(p):
        U = np.eye(16, dtype=complex)
        for _ in range(N_LAYERS):
            for j in range(4):
                U = on_wire(H2, j) @ U
                U = on_wire(rz(-2.0 * p[j]), j) @ U
            for k in range(3):
                U = cnot(k, k + 1) @ U
                U = on_wire(rz(-2.0 * (np.pi - p[k]) * (np.pi - p[k + 1])), k + 1) @ U
                U = cnot(k, k + 1) @ U
            U = cnot(3, 0) @ U
            U = on_wire(rz(-2.0 * (np.pi - p[3]) * (np.pi - p[0])), 0) @ U
            U = cnot(3, 0) @ U
        return U

    out = np.zeros(x1.shape[0], np.float64)
    psi0 = np.zeros(16, complex)
    psi0[0] = 1.0
    for r in range(x1.shape[0]):
        psi = embedding(b[r]).conj().T @ (embedding(a[r]) @ psi0)
        out[r] = np.abs(psi[0]) ** 2
    return out


if __name__ == "__main__":
    key = jax.random.PRNGKey(0)
    ks = jax.random.split(key, 8)
    B = 256
    x1 = jax.random.normal(ks[0], (B, 4), jnp.float32)
    x2 = jax.random.normal(ks[1], (B, 4), jnp.float32)

    def lin_init(kw, kb, fan_in, fan_out):
        bound = 1.0 / np.sqrt(fan_in)
        w = jax.random.uniform(kw, (fan_out, fan_in), jnp.float32, -bound, bound)  # (out, in)
        bvec = jax.random.uniform(kb, (fan_out, 1), jnp.float32, -bound, bound)    # (out, 1)
        return w, bvec

    w1, b1 = lin_init(ks[2], ks[3], 4, 8)
    w2, b2 = lin_init(ks[4], ks[5], 8, 8)
    w3, b3 = lin_init(ks[6], ks[7], 8, 4)
    params = dict(w1=w1, b1=b1, w2=w2, b2=b2, w3=w3, b3=b3)

    out = jax.block_until_ready(model_fidelity_forward(x1, x2, params))
    assert out.shape == (B,)

    nref = 32  # validate a prefix against the gate-by-gate simulator
    ref = reference_forward(np.asarray(x1[:nref]), np.asarray(x2[:nref]), params)
    np.testing.assert_allclose(np.asarray(out)[:nref], ref, atol=2e-3, rtol=2e-3)
    print("KERNEL_OK")
</pallas_src>

<mosaic_0001>
module attributes {stable_mosaic.version = 11 : i64} {
  func.func @fidelity_kernel(%arg0: i32, %arg1: memref<4x128xf32, #tpu.memory_space<vmem>>, %arg2: memref<4x128xf32, #tpu.memory_space<vmem>>, %arg3: memref<240x128xf32, #tpu.memory_space<vmem>>, %arg4: memref<1x128xf32, #tpu.memory_space<vmem>>) attributes {dimension_semantics = [#tpu.dimension_semantics<parallel>], iteration_bounds = array<i64: 2>, scalar_prefetch = 0 : i64, scratch_operands = 0 : i64, tpu.core_type = #tpu.core_type<tc>, window_params = [{transform_indices = @transform_0, window_bounds = array<i64: 4, 128>}, {transform_indices = @transform_1, window_bounds = array<i64: 4, 128>}, {pipeline_mode = #tpu.pipeline_mode<synchronous>, transform_indices = @transform_2, window_bounds = array<i64: 240, 128>}, {transform_indices = @transform_3, window_bounds = array<i64: 1, 128>}]} {
    %c0 = arith.constant 0 : index
    %c0_0 = arith.constant 0 : index
    %0 = vector.load %arg1[%c0, %c0_0] : memref<4x128xf32, #tpu.memory_space<vmem>>, vector<4x128xf32>
    %c0_1 = arith.constant 0 : index
    %c0_2 = arith.constant 0 : index
    %1 = vector.load %arg3[%c0_1, %c0_2] : memref<240x128xf32, #tpu.memory_space<vmem>>, vector<8x128xf32>
    %2 = vector.extract_strided_slice %0 {offsets = [0, 0], sizes = [1, 128], strides = [1, 1]} : vector<4x128xf32> to vector<1x128xf32>
    %3 = vector.broadcast %2 : vector<1x128xf32> to vector<8x128xf32>
    %4 = arith.mulf %1, %3 : vector<8x128xf32>
    %c32 = arith.constant 32 : index
    %c0_3 = arith.constant 0 : index
    %5 = vector.load %arg3[%c32, %c0_3] : memref<240x128xf32, #tpu.memory_space<vmem>>, vector<8x128xf32>
    %6 = arith.addf %4, %5 : vector<8x128xf32>
    %c8 = arith.constant 8 : index
    %c0_4 = arith.constant 0 : index
    %7 = vector.load %arg3[%c8, %c0_4] : memref<240x128xf32, #tpu.memory_space<vmem>>, vector<8x128xf32>
    %8 = vector.extract_strided_slice %0 {offsets = [1, 0], sizes = [1, 128], strides = [1, 1]} : vector<4x128xf32> to vector<1x128xf32>
    %9 = vector.broadcast %8 : vector<1x128xf32> to vector<8x128xf32>
    %10 = arith.mulf %7, %9 : vector<8x128xf32>
    %11 = arith.addf %6, %10 : vector<8x128xf32>
    %c16 = arith.constant 16 : index
    %c0_5 = arith.constant 0 : index
    %12 = vector.load %arg3[%c16, %c0_5] : memref<240x128xf32, #tpu.memory_space<vmem>>, vector<8x128xf32>
    %13 = vector.extract_strided_slice %0 {offsets = [2, 0], sizes = [1, 128], strides = [1, 1]} : vector<4x128xf32> to vector<1x128xf32>
    %14 = vector.broadcast %13 : vector<1x128xf32> to vector<8x128xf32>
    %15 = arith.mulf %12, %14 : vector<8x128xf32>
    %16 = arith.addf %11, %15 : vector<8x128xf32>
    %c24 = arith.constant 24 : index
    %c0_6 = arith.constant 0 : index
    %17 = vector.load %arg3[%c24, %c0_6] : memref<240x128xf32, #tpu.memory_space<vmem>>, vector<8x128xf32>
    %18 = vector.extract_strided_slice %0 {offsets = [3, 0], sizes = [1, 128], strides = [1, 1]} : vector<4x128xf32> to vector<1x128xf32>
    %19 = vector.broadcast %18 : vector<1x128xf32> to vector<8x128xf32>
    %20 = arith.mulf %17, %19 : vector<8x128xf32>
    %21 = arith.addf %16, %20 : vector<8x128xf32>
    %cst = arith.constant 0.000000e+00 : f32
    %22 = vector.broadcast %cst : f32 to vector<8x128xf32>
    %23 = arith.maximumf %21, %22 : vector<8x128xf32>
    %c40 = arith.constant 40 : index
    %c0_7 = arith.constant 0 : index
    %24 = vector.load %arg3[%c40, %c0_7] : memref<240x128xf32, #tpu.memory_space<vmem>>, vector<8x128xf32>
    %25 = vector.extract_strided_slice %23 {offsets = [0, 0], sizes = [1, 128], strides = [1, 1]} : vector<8x128xf32> to vector<1x128xf32>
    %26 = vector.broadcast %25 : vector<1x128xf32> to vector<8x128xf32>
    %27 = arith.mulf %24, %26 : vector<8x128xf32>
    %c104 = arith.constant 104 : index
    %c0_8 = arith.constant 0 : index
    %28 = vector.load %arg3[%c104, %c0_8] : memref<240x128xf32, #tpu.memory_space<vmem>>, vector<8x128xf32>
    %29 = arith.addf %27, %28 : vector<8x128xf32>
    %c48 = arith.constant 48 : index
    %c0_9 = arith.constant 0 : index
    %30 = vector.load %arg3[%c48, %c0_9] : memref<240x128xf32, #tpu.memory_space<vmem>>, vector<8x128xf32>
    %31 = vector.extract_strided_slice %23 {offsets = [1, 0], sizes = [1, 128], strides = [1, 1]} : vector<8x128xf32> to vector<1x128xf32>
    %32 = vector.broadcast %31 : vector<1x128xf32> to vector<8x128xf32>
    %33 = arith.mulf %30, %32 : vector<8x128xf32>
    %34 = arith.addf %29, %33 : vector<8x128xf32>
    %c56 = arith.constant 56 : index
    %c0_10 = arith.constant 0 : index
    %35 = vector.load %arg3[%c56, %c0_10] : memref<240x128xf32, #tpu.memory_space<vmem>>, vector<8x128xf32>
    %36 = vector.extract_strided_slice %23 {offsets = [2, 0], sizes = [1, 128], strides = [1, 1]} : vector<8x128xf32> to vector<1x128xf32>
    %37 = vector.broadcast %36 : vector<1x128xf32> to vector<8x128xf32>
    %38 = arith.mulf %35, %37 : vector<8x128xf32>
    %39 = arith.addf %34, %38 : vector<8x128xf32>
    %c64 = arith.constant 64 : index
    %c0_11 = arith.constant 0 : index
    %40 = vector.load %arg3[%c64, %c0_11] : memref<240x128xf32, #tpu.memory_space<vmem>>, vector<8x128xf32>
    %41 = vector.extract_strided_slice %23 {offsets = [3, 0], sizes = [1, 128], strides = [1, 1]} : vector<8x128xf32> to vector<1x128xf32>
    %42 = vector.broadcast %41 : vector<1x128xf32> to vector<8x128xf32>
    %43 = arith.mulf %40, %42 : vector<8x128xf32>
    %44 = arith.addf %39, %43 : vector<8x128xf32>
    %c72 = arith.constant 72 : index
    %c0_12 = arith.constant 0 : index
    %45 = vector.load %arg3[%c72, %c0_12] : memref<240x128xf32, #tpu.memory_space<vmem>>, vector<8x128xf32>
    %46 = vector.extract_strided_slice %23 {offsets = [4, 0], sizes = [1, 128], strides = [1, 1]} : vector<8x128xf32> to vector<1x128xf32>
    %47 = vector.broadcast %46 : vector<1x128xf32> to vector<8x128xf32>
    %48 = arith.mulf %45, %47 : vector<8x128xf32>
    %49 = arith.addf %44, %48 : vector<8x128xf32>
    %c80 = arith.constant 80 : index
    %c0_13 = arith.constant 0 : index
    %50 = vector.load %arg3[%c80, %c0_13] : memref<240x128xf32, #tpu.memory_space<vmem>>, vector<8x128xf32>
    %51 = vector.extract_strided_slice %23 {offsets = [5, 0], sizes = [1, 128], strides = [1, 1]} : vector<8x128xf32> to vector<1x128xf32>
    %52 = vector.broadcast %51 : vector<1x128xf32> to vector<8x128xf32>
    %53 = arith.mulf %50, %52 : vector<8x128xf32>
    %54 = arith.addf %49, %53 : vector<8x128xf32>
    %c88 = arith.constant 88 : index
    %c0_14 = arith.constant 0 : index
    %55 = vector.load %arg3[%c88, %c0_14] : memref<240x128xf32, #tpu.memory_space<vmem>>, vector<8x128xf32>
    %56 = vector.extract_strided_slice %23 {offsets = [6, 0], sizes = [1, 128], strides = [1, 1]} : vector<8x128xf32> to vector<1x128xf32>
    %57 = vector.broadcast %56 : vector<1x128xf32> to vector<8x128xf32>
    %58 = arith.mulf %55, %57 : vector<8x128xf32>
    %59 = arith.addf %54, %58 : vector<8x128xf32>
    %c96 = arith.constant 96 : index
    %c0_15 = arith.constant 0 : index
    %60 = vector.load %arg3[%c96, %c0_15] : memref<240x128xf32, #tpu.memory_space<vmem>>, vector<8x128xf32>
    %61 = vector.extract_strided_slice %23 {offsets = [7, 0], sizes = [1, 128], strides = [1, 1]} : vector<8x128xf32> to vector<1x128xf32>
    %62 = vector.broadcast %61 : vector<1x128xf32> to vector<8x128xf32>
    %63 = arith.mulf %60, %62 : vector<8x128xf32>
    %64 = arith.addf %59, %63 : vector<8x128xf32>
    %cst_16 = arith.constant 0.000000e+00 : f32
    %65 = vector.broadcast %cst_16 : f32 to vector<8x128xf32>
    %66 = arith.maximumf %64, %65 : vector<8x128xf32>
    %c112 = arith.constant 112 : index
    %c0_17 = arith.constant 0 : index
    %67 = vector.load %arg3[%c112, %c0_17] : memref<240x128xf32, #tpu.memory_space<vmem>>, vector<8x128xf32>
    %68 = vector.extract_strided_slice %66 {offsets = [0, 0], sizes = [1, 128], strides = [1, 1]} : vector<8x128xf32> to vector<1x128xf32>
    %69 = vector.broadcast %68 : vector<1x128xf32> to vector<8x128xf32>
    %70 = arith.mulf %67, %69 : vector<8x128xf32>
    %c176 = arith.constant 176 : index
    %c0_18 = arith.constant 0 : index
    %71 = vector.load %arg3[%c176, %c0_18] : memref<240x128xf32, #tpu.memory_space<vmem>>, vector<8x128xf32>
    %72 = arith.addf %70, %71 : vector<8x128xf32>
    %c120 = arith.constant 120 : index
    %c0_19 = arith.constant 0 : index
    %73 = vector.load %arg3[%c120, %c0_19] : memref<240x128xf32, #tpu.memory_space<vmem>>, vector<8x128xf32>
    %74 = vector.extract_strided_slice %66 {offsets = [1, 0], sizes = [1, 128], strides = [1, 1]} : vector<8x128xf32> to vector<1x128xf32>
    %75 = vector.broadcast %74 : vector<1x128xf32> to vector<8x128xf32>
    %76 = arith.mulf %73, %75 : vector<8x128xf32>
    %77 = arith.addf %72, %76 : vector<8x128xf32>
    %c128 = arith.constant 128 : index
    %c0_20 = arith.constant 0 : index
    %78 = vector.load %arg3[%c128, %c0_20] : memref<240x128xf32, #tpu.memory_space<vmem>>, vector<8x128xf32>
    %79 = vector.extract_strided_slice %66 {offsets = [2, 0], sizes = [1, 128], strides = [1, 1]} : vector<8x128xf32> to vector<1x128xf32>
    %80 = vector.broadcast %79 : vector<1x128xf32> to vector<8x128xf32>
    %81 = arith.mulf %78, %80 : vector<8x128xf32>
    %82 = arith.addf %77, %81 : vector<8x128xf32>
    %c136 = arith.constant 136 : index
    %c0_21 = arith.constant 0 : index
    %83 = vector.load %arg3[%c136, %c0_21] : memref<240x128xf32, #tpu.memory_space<vmem>>, vector<8x128xf32>
    %84 = vector.extract_strided_slice %66 {offsets = [3, 0], sizes = [1, 128], strides = [1, 1]} : vector<8x128xf32> to vector<1x128xf32>
    %85 = vector.broadcast %84 : vector<1x128xf32> to vector<8x128xf32>
    %86 = arith.mulf %83, %85 : vector<8x128xf32>
    %87 = arith.addf %82, %86 : vector<8x128xf32>
    %c144 = arith.constant 144 : index
    %c0_22 = arith.constant 0 : index
    %88 = vector.load %arg3[%c144, %c0_22] : memref<240x128xf32, #tpu.memory_space<vmem>>, vector<8x128xf32>
    %89 = vector.extract_strided_slice %66 {offsets = [4, 0], sizes = [1, 128], strides = [1, 1]} : vector<8x128xf32> to vector<1x128xf32>
    %90 = vector.broadcast %89 : vector<1x128xf32> to vector<8x128xf32>
    %91 = arith.mulf %88, %90 : vector<8x128xf32>
    %92 = arith.addf %87, %91 : vector<8x128xf32>
    %c152 = arith.constant 152 : index
    %c0_23 = arith.constant 0 : index
    %93 = vector.load %arg3[%c152, %c0_23] : memref<240x128xf32, #tpu.memory_space<vmem>>, vector<8x128xf32>
    %94 = vector.extract_strided_slice %66 {offsets = [5, 0], sizes = [1, 128], strides = [1, 1]} : vector<8x128xf32> to vector<1x128xf32>
    %95 = vector.broadcast %94 : vector<1x128xf32> to vector<8x128xf32>
    %96 = arith.mulf %93, %95 : vector<8x128xf32>
    %97 = arith.addf %92, %96 : vector<8x128xf32>
    %c160 = arith.constant 160 : index
    %c0_24 = arith.constant 0 : index
    %98 = vector.load %arg3[%c160, %c0_24] : memref<240x128xf32, #tpu.memory_space<vmem>>, vector<8x128xf32>
    %99 = vector.extract_strided_slice %66 {offsets = [6, 0], sizes = [1, 128], strides = [1, 1]} : vector<8x128xf32> to vector<1x128xf32>
    %100 = vector.broadcast %99 : vector<1x128xf32> to vector<8x128xf32>
    %101 = arith.mulf %98, %100 : vector<8x128xf32>
    %102 = arith.addf %97, %101 : vector<8x128xf32>
    %c168 = arith.constant 168 : index
    %c0_25 = arith.constant 0 : index
    %103 = vector.load %arg3[%c168, %c0_25] : memref<240x128xf32, #tpu.memory_space<vmem>>, vector<8x128xf32>
    %104 = vector.extract_strided_slice %66 {offsets = [7, 0], sizes = [1, 128], strides = [1, 1]} : vector<8x128xf32> to vector<1x128xf32>
    %105 = vector.broadcast %104 : vector<1x128xf32> to vector<8x128xf32>
    %106 = arith.mulf %103, %105 : vector<8x128xf32>
    %107 = arith.addf %102, %106 : vector<8x128xf32>
    %c0_26 = arith.constant 0 : index
    %c0_27 = arith.constant 0 : index
    %108 = vector.load %arg2[%c0_26, %c0_27] : memref<4x128xf32, #tpu.memory_space<vmem>>, vector<4x128xf32>
    %c0_28 = arith.constant 0 : index
    %c0_29 = arith.constant 0 : index
    %109 = vector.load %arg3[%c0_28, %c0_29] : memref<240x128xf32, #tpu.memory_space<vmem>>, vector<8x128xf32>
    %110 = vector.extract_strided_slice %108 {offsets = [0, 0], sizes = [1, 128], strides = [1, 1]} : vector<4x128xf32> to vector<1x128xf32>
    %111 = vector.broadcast %110 : vector<1x128xf32> to vector<8x128xf32>
    %112 = arith.mulf %109, %111 : vector<8x128xf32>
    %c32_30 = arith.constant 32 : index
    %c0_31 = arith.constant 0 : index
    %113 = vector.load %arg3[%c32_30, %c0_31] : memref<240x128xf32, #tpu.memory_space<vmem>>, vector<8x128xf32>
    %114 = arith.addf %112, %113 : vector<8x128xf32>
    %c8_32 = arith.constant 8 : index
    %c0_33 = arith.constant 0 : index
    %115 = vector.load %arg3[%c8_32, %c0_33] : memref<240x128xf32, #tpu.memory_space<vmem>>, vector<8x128xf32>
    %116 = vector.extract_strided_slice %108 {offsets = [1, 0], sizes = [1, 128], strides = [1, 1]} : vector<4x128xf32> to vector<1x128xf32>
    %117 = vector.broadcast %116 : vector<1x128xf32> to vector<8x128xf32>
    %118 = arith.mulf %115, %117 : vector<8x128xf32>
    %119 = arith.addf %114, %118 : vector<8x128xf32>
    %c16_34 = arith.constant 16 : index
    %c0_35 = arith.constant 0 : index
    %120 = vector.load %arg3[%c16_34, %c0_35] : memref<240x128xf32, #tpu.memory_space<vmem>>, vector<8x128xf32>
    %121 = vector.extract_strided_slice %108 {offsets = [2, 0], sizes = [1, 128], strides = [1, 1]} : vector<4x128xf32> to vector<1x128xf32>
    %122 = vector.broadcast %121 : vector<1x128xf32> to vector<8x128xf32>
    %123 = arith.mulf %120, %122 : vector<8x128xf32>
    %124 = arith.addf %119, %123 : vector<8x128xf32>
    %c24_36 = arith.constant 24 : index
    %c0_37 = arith.constant 0 : index
    %125 = vector.load %arg3[%c24_36, %c0_37] : memref<240x128xf32, #tpu.memory_space<vmem>>, vector<8x128xf32>
    %126 = vector.extract_strided_slice %108 {offsets = [3, 0], sizes = [1, 128], strides = [1, 1]} : vector<4x128xf32> to vector<1x128xf32>
    %127 = vector.broadcast %126 : vector<1x128xf32> to vector<8x128xf32>
    %128 = arith.mulf %125, %127 : vector<8x128xf32>
    %129 = arith.addf %124, %128 : vector<8x128xf32>
    %cst_38 = arith.constant 0.000000e+00 : f32
    %130 = vector.broadcast %cst_38 : f32 to vector<8x128xf32>
    %131 = arith.maximumf %129, %130 : vector<8x128xf32>
    %c40_39 = arith.constant 40 : index
    %c0_40 = arith.constant 0 : index
    %132 = vector.load %arg3[%c40_39, %c0_40] : memref<240x128xf32, #tpu.memory_space<vmem>>, vector<8x128xf32>
    %133 = vector.extract_strided_slice %131 {offsets = [0, 0], sizes = [1, 128], strides = [1, 1]} : vector<8x128xf32> to vector<1x128xf32>
    %134 = vector.broadcast %133 : vector<1x128xf32> to vector<8x128xf32>
    %135 = arith.mulf %132, %134 : vector<8x128xf32>
    %c104_41 = arith.constant 104 : index
    %c0_42 = arith.constant 0 : index
    %136 = vector.load %arg3[%c104_41, %c0_42] : memref<240x128xf32, #tpu.memory_space<vmem>>, vector<8x128xf32>
    %137 = arith.addf %135, %136 : vector<8x128xf32>
    %c48_43 = arith.constant 48 : index
    %c0_44 = arith.constant 0 : index
    %138 = vector.load %arg3[%c48_43, %c0_44] : memref<240x128xf32, #tpu.memory_space<vmem>>, vector<8x128xf32>
    %139 = vector.extract_strided_slice %131 {offsets = [1, 0], sizes = [1, 128], strides = [1, 1]} : vector<8x128xf32> to vector<1x128xf32>
    %140 = vector.broadcast %139 : vector<1x128xf32> to vector<8x128xf32>
    %141 = arith.mulf %138, %140 : vector<8x128xf32>
    %142 = arith.addf %137, %141 : vector<8x128xf32>
    %c56_45 = arith.constant 56 : index
    %c0_46 = arith.constant 0 : index
    %143 = vector.load %arg3[%c56_45, %c0_46] : memref<240x128xf32, #tpu.memory_space<vmem>>, vector<8x128xf32>
    %144 = vector.extract_strided_slice %131 {offsets = [2, 0], sizes = [1, 128], strides = [1, 1]} : vector<8x128xf32> to vector<1x128xf32>
    %145 = vector.broadcast %144 : vector<1x128xf32> to vector<8x128xf32>
    %146 = arith.mulf %143, %145 : vector<8x128xf32>
    %147 = arith.addf %142, %146 : vector<8x128xf32>
    %c64_47 = arith.constant 64 : index
    %c0_48 = arith.constant 0 : index
    %148 = vector.load %arg3[%c64_47, %c0_48] : memref<240x128xf32, #tpu.memory_space<vmem>>, vector<8x128xf32>
    %149 = vector.extract_strided_slice %131 {offsets = [3, 0], sizes = [1, 128], strides = [1, 1]} : vector<8x128xf32> to vector<1x128xf32>
    %150 = vector.broadcast %149 : vector<1x128xf32> to vector<8x128xf32>
    %151 = arith.mulf %148, %150 : vector<8x128xf32>
    %152 = arith.addf %147, %151 : vector<8x128xf32>
    %c72_49 = arith.constant 72 : index
    %c0_50 = arith.constant 0 : index
    %153 = vector.load %arg3[%c72_49, %c0_50] : memref<240x128xf32, #tpu.memory_space<vmem>>, vector<8x128xf32>
    %154 = vector.extract_strided_slice %131 {offsets = [4, 0], sizes = [1, 128], strides = [1, 1]} : vector<8x128xf32> to vector<1x128xf32>
    %155 = vector.broadcast %154 : vector<1x128xf32> to vector<8x128xf32>
    %156 = arith.mulf %153, %155 : vector<8x128xf32>
    %157 = arith.addf %152, %156 : vector<8x128xf32>
    %c80_51 = arith.constant 80 : index
    %c0_52 = arith.constant 0 : index
    %158 = vector.load %arg3[%c80_51, %c0_52] : memref<240x128xf32, #tpu.memory_space<vmem>>, vector<8x128xf32>
    %159 = vector.extract_strided_slice %131 {offsets = [5, 0], sizes = [1, 128], strides = [1, 1]} : vector<8x128xf32> to vector<1x128xf32>
    %160 = vector.broadcast %159 : vector<1x128xf32> to vector<8x128xf32>
    %161 = arith.mulf %158, %160 : vector<8x128xf32>
    %162 = arith.addf %157, %161 : vector<8x128xf32>
    %c88_53 = arith.constant 88 : index
    %c0_54 = arith.constant 0 : index
    %163 = vector.load %arg3[%c88_53, %c0_54] : memref<240x128xf32, #tpu.memory_space<vmem>>, vector<8x128xf32>
    %164 = vector.extract_strided_slice %131 {offsets = [6, 0], sizes = [1, 128], strides = [1, 1]} : vector<8x128xf32> to vector<1x128xf32>
    %165 = vector.broadcast %164 : vector<1x128xf32> to vector<8x128xf32>
    %166 = arith.mulf %163, %165 : vector<8x128xf32>
    %167 = arith.addf %162, %166 : vector<8x128xf32>
    %c96_55 = arith.constant 96 : index
    %c0_56 = arith.constant 0 : index
    %168 = vector.load %arg3[%c96_55, %c0_56] : memref<240x128xf32, #tpu.memory_space<vmem>>, vector<8x128xf32>
    %169 = vector.extract_strided_slice %131 {offsets = [7, 0], sizes = [1, 128], strides = [1, 1]} : vector<8x128xf32> to vector<1x128xf32>
    %170 = vector.broadcast %169 : vector<1x128xf32> to vector<8x128xf32>
    %171 = arith.mulf %168, %170 : vector<8x128xf32>
    %172 = arith.addf %167, %171 : vector<8x128xf32>
    %cst_57 = arith.constant 0.000000e+00 : f32
    %173 = vector.broadcast %cst_57 : f32 to vector<8x128xf32>
    %174 = arith.maximumf %172, %173 : vector<8x128xf32>
    %c112_58 = arith.constant 112 : index
    %c0_59 = arith.constant 0 : index
    %175 = vector.load %arg3[%c112_58, %c0_59] : memref<240x128xf32, #tpu.memory_space<vmem>>, vector<8x128xf32>
    %176 = vector.extract_strided_slice %174 {offsets = [0, 0], sizes = [1, 128], strides = [1, 1]} : vector<8x128xf32> to vector<1x128xf32>
    %177 = vector.broadcast %176 : vector<1x128xf32> to vector<8x128xf32>
    %178 = arith.mulf %175, %177 : vector<8x128xf32>
    %c176_60 = arith.constant 176 : index
    %c0_61 = arith.constant 0 : index
    %179 = vector.load %arg3[%c176_60, %c0_61] : memref<240x128xf32, #tpu.memory_space<vmem>>, vector<8x128xf32>
    %180 = arith.addf %178, %179 : vector<8x128xf32>
    %c120_62 = arith.constant 120 : index
    %c0_63 = arith.constant 0 : index
    %181 = vector.load %arg3[%c120_62, %c0_63] : memref<240x128xf32, #tpu.memory_space<vmem>>, vector<8x128xf32>
    %182 = vector.extract_strided_slice %174 {offsets = [1, 0], sizes = [1, 128], strides = [1, 1]} : vector<8x128xf32> to vector<1x128xf32>
    %183 = vector.broadcast %182 : vector<1x128xf32> to vector<8x128xf32>
    %184 = arith.mulf %181, %183 : vector<8x128xf32>
    %185 = arith.addf %180, %184 : vector<8x128xf32>
    %c128_64 = arith.constant 128 : index
    %c0_65 = arith.constant 0 : index
    %186 = vector.load %arg3[%c128_64, %c0_65] : memref<240x128xf32, #tpu.memory_space<vmem>>, vector<8x128xf32>
    %187 = vector.extract_strided_slice %174 {offsets = [2, 0], sizes = [1, 128], strides = [1, 1]} : vector<8x128xf32> to vector<1x128xf32>
    %188 = vector.broadcast %187 : vector<1x128xf32> to vector<8x128xf32>
    %189 = arith.mulf %186, %188 : vector<8x128xf32>
    %190 = arith.addf %185, %189 : vector<8x128xf32>
    %c136_66 = arith.constant 136 : index
    %c0_67 = arith.constant 0 : index
    %191 = vector.load %arg3[%c136_66, %c0_67] : memref<240x128xf32, #tpu.memory_space<vmem>>, vector<8x128xf32>
    %192 = vector.extract_strided_slice %174 {offsets = [3, 0], sizes = [1, 128], strides = [1, 1]} : vector<8x128xf32> to vector<1x128xf32>
    %193 = vector.broadcast %192 : vector<1x128xf32> to vector<8x128xf32>
    %194 = arith.mulf %191, %193 : vector<8x128xf32>
    %195 = arith.addf %190, %194 : vector<8x128xf32>
    %c144_68 = arith.constant 144 : index
    %c0_69 = arith.constant 0 : index
    %196 = vector.load %arg3[%c144_68, %c0_69] : memref<240x128xf32, #tpu.memory_space<vmem>>, vector<8x128xf32>
    %197 = vector.extract_strided_slice %174 {offsets = [4, 0], sizes = [1, 128], strides = [1, 1]} : vector<8x128xf32> to vector<1x128xf32>
    %198 = vector.broadcast %197 : vector<1x128xf32> to vector<8x128xf32>
    %199 = arith.mulf %196, %198 : vector<8x128xf32>
    %200 = arith.addf %195, %199 : vector<8x128xf32>
    %c152_70 = arith.constant 152 : index
    %c0_71 = arith.constant 0 : index
    %201 = vector.load %arg3[%c152_70, %c0_71] : memref<240x128xf32, #tpu.memory_space<vmem>>, vector<8x128xf32>
    %202 = vector.extract_strided_slice %174 {offsets = [5, 0], sizes = [1, 128], strides = [1, 1]} : vector<8x128xf32> to vector<1x128xf32>
    %203 = vector.broadcast %202 : vector<1x128xf32> to vector<8x128xf32>
    %204 = arith.mulf %201, %203 : vector<8x128xf32>
    %205 = arith.addf %200, %204 : vector<8x128xf32>
    %c160_72 = arith.constant 160 : index
    %c0_73 = arith.constant 0 : index
    %206 = vector.load %arg3[%c160_72, %c0_73] : memref<240x128xf32, #tpu.memory_space<vmem>>, vector<8x128xf32>
    %207 = vector.extract_strided_slice %174 {offsets = [6, 0], sizes = [1, 128], strides = [1, 1]} : vector<8x128xf32> to vector<1x128xf32>
    %208 = vector.broadcast %207 : vector<1x128xf32> to vector<8x128xf32>
    %209 = arith.mulf %206, %208 : vector<8x128xf32>
    %210 = arith.addf %205, %209 : vector<8x128xf32>
    %c168_74 = arith.constant 168 : index
    %c0_75 = arith.constant 0 : index
    %211 = vector.load %arg3[%c168_74, %c0_75] : memref<240x128xf32, #tpu.memory_space<vmem>>, vector<8x128xf32>
    %212 = vector.extract_strided_slice %174 {offsets = [7, 0], sizes = [1, 128], strides = [1, 1]} : vector<8x128xf32> to vector<1x128xf32>
    %213 = vector.broadcast %212 : vector<1x128xf32> to vector<8x128xf32>
    %214 = arith.mulf %211, %213 : vector<8x128xf32>
    %215 = arith.addf %210, %214 : vector<8x128xf32>
    %216 = arith.subf %107, %215 : vector<8x128xf32>
    %cst_76 = arith.constant 3.14159274 : f32
    %217 = vector.broadcast %cst_76 : f32 to vector<8x128xf32>
    %218 = arith.subf %217, %107 : vector<8x128xf32>
    %cst_77 = arith.constant 3.14159274 : f32
    %219 = vector.broadcast %cst_77 : f32 to vector<8x128xf32>
    %220 = arith.subf %219, %215 : vector<8x128xf32>
    %c184 = arith.constant 184 : index
    %c0_78 = arith.constant 0 : index
    %221 = vector.load %arg3[%c184, %c0_78] : memref<240x128xf32, #tpu.memory_space<vmem>>, vector<8x128xf32>
    %222 = vector.extract_strided_slice %216 {offsets = [0, 0], sizes = [1, 128], strides = [1, 1]} : vector<8x128xf32> to vector<1x128xf32>
    %223 = vector.broadcast %222 : vector<1x128xf32> to vector<8x128xf32>
    %224 = arith.mulf %221, %223 : vector<8x128xf32>
    %c192 = arith.constant 192 : index
    %c0_79 = arith.constant 0 : index
    %225 = vector.load %arg3[%c192, %c0_79] : memref<240x128xf32, #tpu.memory_space<vmem>>, vector<8x128xf32>
    %226 = vector.extract_strided_slice %216 {offsets = [1, 0], sizes = [1, 128], strides = [1, 1]} : vector<8x128xf32> to vector<1x128xf32>
    %227 = vector.broadcast %226 : vector<1x128xf32> to vector<8x128xf32>
    %228 = arith.mulf %225, %227 : vector<8x128xf32>
    %229 = arith.addf %224, %228 : vector<8x128xf32>
    %c200 = arith.constant 200 : index
    %c0_80 = arith.constant 0 : index
    %230 = vector.load %arg3[%c200, %c0_80] : memref<240x128xf32, #tpu.memory_space<vmem>>, vector<8x128xf32>
    %231 = vector.extract_strided_slice %216 {offsets = [2, 0], sizes = [1, 128], strides = [1, 1]} : vector<8x128xf32> to vector<1x128xf32>
    %232 = vector.broadcast %231 : vector<1x128xf32> to vector<8x128xf32>
    %233 = arith.mulf %230, %232 : vector<8x128xf32>
    %234 = arith.addf %229, %233 : vector<8x128xf32>
    %235 = vector.extract_strided_slice %216 {offsets = [3, 0], sizes = [1, 128], strides = [1, 1]} : vector<8x128xf32> to vector<1x128xf32>
    %236 = vector.broadcast %235 : vector<1x128xf32> to vector<8x128xf32>
    %237 = arith.addf %234, %236 : vector<8x128xf32>
    %c208 = arith.constant 208 : index
    %c0_81 = arith.constant 0 : index
    %238 = vector.load %arg3[%c208, %c0_81] : memref<240x128xf32, #tpu.memory_space<vmem>>, vector<8x128xf32>
    %239 = vector.extract_strided_slice %218 {offsets = [0, 0], sizes = [1, 128], strides = [1, 1]} : vector<8x128xf32> to vector<1x128xf32>
    %240 = vector.extract_strided_slice %218 {offsets = [1, 0], sizes = [1, 128], strides = [1, 1]} : vector<8x128xf32> to vector<1x128xf32>
    %241 = arith.mulf %239, %240 : vector<1x128xf32>
    %242 = vector.extract_strided_slice %220 {offsets = [0, 0], sizes = [1, 128], strides = [1, 1]} : vector<8x128xf32> to vector<1x128xf32>
    %243 = vector.extract_strided_slice %220 {offsets = [1, 0], sizes = [1, 128], strides = [1, 1]} : vector<8x128xf32> to vector<1x128xf32>
    %244 = arith.mulf %242, %243 : vector<1x128xf32>
    %245 = arith.subf %241, %244 : vector<1x128xf32>
    %246 = vector.broadcast %245 : vector<1x128xf32> to vector<8x128xf32>
    %247 = arith.mulf %238, %246 : vector<8x128xf32>
    %c216 = arith.constant 216 : index
    %c0_82 = arith.constant 0 : index
    %248 = vector.load %arg3[%c216, %c0_82] : memref<240x128xf32, #tpu.memory_space<vmem>>, vector<8x128xf32>
    %249 = vector.extract_strided_slice %218 {offsets = [1, 0], sizes = [1, 128], strides = [1, 1]} : vector<8x128xf32> to vector<1x128xf32>
    %250 = vector.extract_strided_slice %218 {offsets = [2, 0], sizes = [1, 128], strides = [1, 1]} : vector<8x128xf32> to vector<1x128xf32>
    %251 = arith.mulf %249, %250 : vector<1x128xf32>
    %252 = vector.extract_strided_slice %220 {offsets = [1, 0], sizes = [1, 128], strides = [1, 1]} : vector<8x128xf32> to vector<1x128xf32>
    %253 = vector.extract_strided_slice %220 {offsets = [2, 0], sizes = [1, 128], strides = [1, 1]} : vector<8x128xf32> to vector<1x128xf32>
    %254 = arith.mulf %252, %253 : vector<1x128xf32>
    %255 = arith.subf %251, %254 : vector<1x128xf32>
    %256 = vector.broadcast %255 : vector<1x128xf32> to vector<8x128xf32>
    %257 = arith.mulf %248, %256 : vector<8x128xf32>
    %258 = arith.addf %247, %257 : vector<8x128xf32>
    %c224 = arith.constant 224 : index
    %c0_83 = arith.constant 0 : index
    %259 = vector.load %arg3[%c224, %c0_83] : memref<240x128xf32, #tpu.memory_space<vmem>>, vector<8x128xf32>
    %260 = vector.extract_strided_slice %218 {offsets = [2, 0], sizes = [1, 128], strides = [1, 1]} : vector<8x128xf32> to vector<1x128xf32>
    %261 = vector.extract_strided_slice %218 {offsets = [3, 0], sizes = [1, 128], strides = [1, 1]} : vector<8x128xf32> to vector<1x128xf32>
    %262 = arith.mulf %260, %261 : vector<1x128xf32>
    %263 = vector.extract_strided_slice %220 {offsets = [2, 0], sizes = [1, 128], strides = [1, 1]} : vector<8x128xf32> to vector<1x128xf32>
    %264 = vector.extract_strided_slice %220 {offsets = [3, 0], sizes = [1, 128], strides = [1, 1]} : vector<8x128xf32> to vector<1x128xf32>
    %265 = arith.mulf %263, %264 : vector<1x128xf32>
    %266 = arith.subf %262, %265 : vector<1x128xf32>
    %267 = vector.broadcast %266 : vector<1x128xf32> to vector<8x128xf32>
    %268 = arith.mulf %259, %267 : vector<8x128xf32>
    %269 = arith.addf %258, %268 : vector<8x128xf32>
    %c232 = arith.constant 232 : index
    %c0_84 = arith.constant 0 : index
    %270 = vector.load %arg3[%c232, %c0_84] : memref<240x128xf32, #tpu.memory_space<vmem>>, vector<8x128xf32>
    %271 = vector.extract_strided_slice %218 {offsets = [3, 0], sizes = [1, 128], strides = [1, 1]} : vector<8x128xf32> to vector<1x128xf32>
    %272 = vector.extract_strided_slice %218 {offsets = [0, 0], sizes = [1, 128], strides = [1, 1]} : vector<8x128xf32> to vector<1x128xf32>
    %273 = arith.mulf %271, %272 : vector<1x128xf32>
    %274 = vector.extract_strided_slice %220 {offsets = [3, 0], sizes = [1, 128], strides = [1, 1]} : vector<8x128xf32> to vector<1x128xf32>
    %275 = vector.extract_strided_slice %220 {offsets = [0, 0], sizes = [1, 128], strides = [1, 1]} : vector<8x128xf32> to vector<1x128xf32>
    %276 = arith.mulf %274, %275 : vector<1x128xf32>
    %277 = arith.subf %273, %276 : vector<1x128xf32>
    %278 = vector.broadcast %277 : vector<1x128xf32> to vector<8x128xf32>
    %279 = arith.mulf %270, %278 : vector<8x128xf32>
    %280 = arith.addf %269, %279 : vector<8x128xf32>
    %281 = math.cos %237 : vector<8x128xf32>
    %282 = math.cos %280 : vector<8x128xf32>
    %283 = math.sin %280 : vector<8x128xf32>
    %284 = arith.mulf %281, %282 : vector<8x128xf32>
    %cst_85 = arith.constant dense<0.000000e+00> : vector<128xf32>
    %285 = vector.multi_reduction <add>, %284, %cst_85 [0] : vector<8x128xf32> to vector<128xf32>
    %286 = vector.shape_cast %285 : vector<128xf32> to vector<1x128xf32>
    %cst_86 = arith.constant 1.250000e-01 : f32
    %287 = vector.broadcast %cst_86 : f32 to vector<1x128xf32>
    %288 = arith.mulf %286, %287 : vector<1x128xf32>
    %289 = arith.mulf %281, %283 : vector<8x128xf32>
    %cst_87 = arith.constant dense<0.000000e+00> : vector<128xf32>
    %290 = vector.multi_reduction <add>, %289, %cst_87 [0] : vector<8x128xf32> to vector<128xf32>
    %291 = vector.shape_cast %290 : vector<128xf32> to vector<1x128xf32>
    %cst_88 = arith.constant 1.250000e-01 : f32
    %292 = vector.broadcast %cst_88 : f32 to vector<1x128xf32>
    %293 = arith.mulf %291, %292 : vector<1x128xf32>
    %294 = arith.mulf %288, %288 : vector<1x128xf32>
    %295 = arith.mulf %293, %293 : vector<1x128xf32>
    %296 = arith.addf %294, %295 : vector<1x128xf32>
    %c0_89 = arith.constant 0 : index
    %c0_90 = arith.constant 0 : index
    %297 = vector.load %arg4[%c0_89, %c0_90] : memref<1x128xf32, #tpu.memory_space<vmem>>, vector<1x128xf32>
    tpu.vector_store %arg4[%c0_89, %c0_90], %296 {strides = array<i32>} : memref<1x128xf32, #tpu.memory_space<vmem>>, vector<1x128xf32>,
    return
  }
  func.func @transform_0(%arg0: i32) -> (i32, i32) {
    %c0_i32 = arith.constant 0 : i32
    %c0_i32_0 = arith.constant 0 : i32
    return %c0_i32, %arg0 : i32, i32
  }
  func.func @transform_1(%arg0: i32) -> (i32, i32) {
    %c0_i32 = arith.constant 0 : i32
    %c0_i32_0 = arith.constant 0 : i32
    return %c0_i32, %arg0 : i32, i32
  }
  func.func @transform_2(%arg0: i32) -> (i32, i32) {
    %c0_i32 = arith.constant 0 : i32
    %c0_i32_0 = arith.constant 0 : i32
    %c0_i32_1 = arith.constant 0 : i32
    return %c0_i32, %c0_i32_0 : i32, i32
  }
  func.func @transform_3(%arg0: i32) -> (i32, i32) {
    %c0_i32 = arith.constant 0 : i32
    %c0_i32_0 = arith.constant 0 : i32
    return %c0_i32, %arg0 : i32, i32
  }
}

</mosaic_0001>

<bundles_post_ra>
// kernel: tpu_custom_call.1
= control target key start
LH: loop header
LB: loop body
LE: loop exit
PB: predicated region body
PF: predicated region fallthrough
CT: control target
= control target key end

     0   :  { %8 = vsyncpa [#allocation3], 0  ;;  %s1689_s0 = inlined_call_operand.hbm [shape: f32[4,256], index: 0, kind: input, shape index: {}]   ;;  %s1690_s1 = inlined_call_operand.hbm [shape: f32[4,256], index: 1, kind: input, shape index: {}]   ;;  %s1691_s2 = inlined_call_operand.hbm [shape: f32[240,128], index: 2, kind: input, shape index: {}]   ;;  %s1692_s3 = inlined_call_operand.hbm [shape: f32[1,256], index: 3, kind: output, shape index: {}]  }
   0x1   :  { %10 = vsyncpa [#allocation3 + $0x1], 0 }
   0x2   :  { %11 = vsyncpa [#allocation6], 0 }
   0x3   :  { %13 = vsyncpa [#allocation6 + $0x1], 0 }
   0x4   :  { %14 = vsyncpa [#allocation4], 0 }
   0x5   :  { %16 = vsyncpa [#allocation4 + $0x1], 0  ;;  %s1326_s12 = smov 0   ;;  %s1328_s13 = smov 0  }
   0x6   :  { %s1330_s14 = smov 0   ;;  %s1332_s15 = smov 0  }
   0x7 LB: > { %s1347_s16 = sadd.s32 4294967295, %s1292_s15   ;;  %s1017_s17 = sadd.s32 4294967294, %s1292_s15   ;;  %s1292_s15 = sphi %s1332_s15, %s1716_s15   ;;  %s1288_s14 = sphi %s1330_s14, %s1715_s14   ;;  %s1284_s13 = sphi %s1328_s13, %s1714_s13   ;;  %s1280_s12 = sphi %s1326_s12, %s1713_s12  }
   0x8   : > { %p42_p0 = scmp.ne.s32.totalorder %s1284_s13, %s1280_s12  ;;  %p1693_p1 = scmp.eq.s32.totalorder %s1347_s16, 0 }
   0x9   : > { %p119_p3 = scmp.eq.s32.totalorder %s1017_s17, 1  ;;  %p1018_p5 = scmp.ge.s32.totalorder %s1292_s15, 1 }
   0xa   : > { %p1356_p4 = por %p1693_p1, %p42_p0  ;;  %p126_p7 = scmp.lt.s32.totalorder %s1292_s15, 3 }
   0xb   : > { %p1361_p6 = por %p119_p3, %p42_p0  ;;  %s1294_s21 = smov [#allocation7]  }
   0xc   : > { %s1697_s18 = scalar_select %p1356_p4, 1, 0 }
   0xd   : > { %s1698_s19 = scalar_select %p1361_p6, 1, 0 }
   0xe   : > { %p1366_p8 = pnand %p1018_p5, %p126_p7  ;;  %s138_s22 = sshll.u32 %s1294_s21, 4  ;;  %s1370_s22 = int_to_ptr.vmem [resolvable:$true] %s138_s22 }
   0xf   : > { %s1382_s24 = sadd.s32 1, %s1292_s15   ;;  %s29_s25 = sadd.s32 1, %s1288_s14 }
  0x10   : > { %s1699_s20 = scalar_select %p1366_p8, 1, 0 }
  0x11   : > { %p1062_p9 = pneg %p1366_p8  ;;  %s26_s26 = ssub.s32 %s1292_s15, %s1382_s24 }
  0x12   : > { %s1130_s29 = scalar_lea.hbm %s1691_s2, 3840 }
  0x13   : > { %p1377_p11 = pnand %p1062_p9, %p1693_p1  ;;  %p1131_p12 = scmp.ne.s32.totalorder %s1691_s2, %s1130_s29 }
  0x14   : > { %p1137_p5 = scmp.lt.u32.totalorder %s1130_s29, %s1691_s2 }
  0x15   : > { %p1132_p13 = pneg %p1377_p11 }
  0x17   : > { %p1133_p0 = pnand %p1132_p13, %p1131_p12 }
  0x19   : > { %p1134_p3 = pneg %p1133_p0 }
  0x1b   : > { %p1139_p7 = pnand %p1137_p5, %p1134_p3 }
  0x1d   : > { %1142 = shalt.err (!%p1139_p7)
}
  0x1e   : > { %s1143_s7 = scalar_lea.vmem %s1370_s22, 3840  ;;  %p1151_p2 = scmp.lt.s32.totalorder %s1370_s22, %s1370_s22 }
  0x1f   : > { %p1144_p9 = scmp.ne.s32.totalorder %s1370_s22, %s1143_s7  ;;  %p1152_p6 = scmp.lt.s32.totalorder %s1143_s7, %s1143_s7 }
  0x21   : > { %p1146_p10 = pnand %p1144_p9, %p1132_p13  ;;  %p1153_p4 = por %p1152_p6, %p1151_p2 }
  0x23   : > { %p1147_p1 = pneg %p1146_p10 }
  0x25   : > { %p1154_p8 = pnand %p1153_p4, %p1147_p1 }
  0x27   : > { %1157 = shalt.err (!%p1154_p8)
}
  0x28   : > { %s1295_s8 = smov 128   ;;  %s1296_s9 = smov 8  }
  0x29   : > { %1065 = dma.hbm_to_vmem [thread:$0]  (!%p1377_p11), %s1691_s2, 3840, %s1370_s22, [#allocation6], %s1295_s8, %s1295_s8, %s1296_s9  }
  0x2a   : > { %p27_p2 = scmp.eq.s32.totalorder %s26_s26, 0  ;;  %p36_p1 = scmp.ne.s32.totalorder %s1288_s14, %s1284_s13 }
  0x2b   : > { %p37_p4 = scmp.eq.s32.totalorder %s1292_s15, 0  ;;  %p1078_p6 = scmp.lt.s32.totalorder %s1292_s15, 2 }
  0x2c   : > { %s1413_s17 = scalar_select %p27_p2, %s1288_s14, %s29_s25  }
  0x2d   : > { %p38_p8 = por %p37_p4, %p36_p1  ;;  %p1701_p10 = scmp.eq.s32.totalorder %s1347_s16, 1 }
  0x2e   : > { %s152_s27 = sand.u32 1, %s1288_s14   ;;  %s1022_s28 = sshll.u32 %s1292_s15, 6 }
  0x2f   : > { %p1417_p12 = por %p1701_p10, %p36_p1  ;;  %s1423_s29 = sshll.u32 %s152_s27, 2 }
  0x30   : > { %s1428_s22 = scalar_lea.hbm %s1689_s0, %s1022_s28  ;;  %s156_s25 = scalar_lea.vmem [#allocation2], %s1423_s29 }
  0x31   : > { %s1702_s21 = scalar_select %p1417_p12, 1, 0 }
  0x32   : > { %s163_s26 = sshll.u32 %s156_s25, 4  ;;  %p1431_p11 = pnand %p1078_p6, %p38_p8  ;;  %s1435_s26 = int_to_ptr.vmem [resolvable:$true] %s163_s26 }
  0x33   : > { %s1440_s7 = scalar_lea.hbm %s1690_s1, %s1022_s28  ;;  %s153_s8 = scalar_lea.sflag [#allocation3], %s152_s27 }
  0x34   : > { %s1158_s9 = scalar_lea.hbm %s1428_s22, 64  ;;  %p1160_p0 = pneg %p1431_p11 }
  0x35   : > { %p1159_p13 = scmp.ne.s32.totalorder %s1428_s22, %s1158_s9  ;;  %s1163_s23 = scalar_lea.hbm %s1689_s0, 128 }
  0x36   : > { %p1164_p7 = scmp.lt.u32.totalorder %s1428_s22, %s1689_s0  ;;  %p1165_p9 = scmp.lt.u32.totalorder %s1163_s23, %s1158_s9 }
  0x37   : > { %p1161_p3 = pnand %p1160_p0, %p1159_p13  ;;  %p1167_p1 = scmp.lt.u32.totalorder %s1158_s9, %s1428_s22 }
  0x38   : > { %p1166_p2 = por %p1165_p9, %p1164_p7 }
  0x39   : > { %p1162_p5 = pneg %p1161_p3 }
  0x3a   : > { %p1168_p4 = por %p1167_p1, %p1166_p2 }
  0x3c   : > { %p1169_p6 = pnand %p1168_p4, %p1162_p5 }
  0x3e   : > { %1172 = shalt.err (!%p1169_p6)
}
  0x3f   : > { %s1173_s27 = scalar_lea.vmem %s1435_s26, 64  ;;  %s1297_s28 = smov [#allocation2]  }
  0x40   : > { %p1174_p8 = scmp.ne.s32.totalorder %s1435_s26, %s1173_s27  ;;  %s1178_s5 = sshll.u32 %s1297_s28, 4  ;;  %s1179_s5 = int_to_ptr.vmem [resolvable:$false] %s1178_s5 }
  0x41   : > { %s1180_s6 = scalar_lea.vmem %s1179_s5, 128  ;;  %p1181_p3 = scmp.lt.s32.totalorder %s1435_s26, %s1179_s5 }
  0x42   : > { %p1176_p10 = pnand %p1174_p8, %p1160_p0  ;;  %p1182_p7 = scmp.lt.s32.totalorder %s1180_s6, %s1173_s27 }
  0x44   : > { %p1177_p13 = pneg %p1176_p10  ;;  %p1183_p9 = por %p1182_p7, %p1181_p3 }
  0x46   : > { %p1184_p2 = pnand %p1183_p9, %p1177_p13 }
  0x48   : > { %1187 = shalt.err (!%p1184_p2)
}
  0x49   : > { %1069 = dma.hbm_to_vmem [thread:$0]  (!%p1431_p11), %s1428_s22, 64, %s1435_s26, %s153_s8  }
  0x4a   : > { %s170_s9 = sand.u32 1, %s1292_s15   ;;  %s174_s10 = scalar_lea.vmem [#allocation5], %s1423_s29 }
  0x4b   : > { %s181_s11 = sshll.u32 %s174_s10, 4  ;;  %s171_s23 = scalar_lea.sflag [#allocation6], %s170_s9  ;;  %s182_s11 = int_to_ptr.vmem [resolvable:$true] %s181_s11 }
  0x4c   : > { %s1188_s30 = scalar_lea.hbm %s1440_s7, 64  ;;  %s1193_s28 = scalar_lea.hbm %s1690_s1, 128 }
  0x4d   : > { %p1189_p5 = scmp.ne.s32.totalorder %s1440_s7, %s1188_s30  ;;  %p1194_p6 = scmp.lt.u32.totalorder %s1440_s7, %s1690_s1 }
  0x4e   : > { %p1195_p8 = scmp.lt.u32.totalorder %s1193_s28, %s1188_s30  ;;  %p1197_p13 = scmp.lt.u32.totalorder %s1188_s30, %s1440_s7 }
  0x4f   : > { %p1191_p1 = pnand %p1189_p5, %p1160_p0 }
  0x50   : > { %p1196_p10 = por %p1195_p8, %p1194_p6 }
  0x51   : > { %p1192_p4 = pneg %p1191_p1 }
  0x52   : > { %p1198_p3 = por %p1197_p13, %p1196_p10 }
  0x54   : > { %p1199_p7 = pnand %p1198_p3, %p1192_p4 }
  0x56   : > { %1202 = shalt.err (!%p1199_p7)
}
  0x57   : > { %s1203_s29 = scalar_lea.vmem %s182_s11, 64  ;;  %s1298_s22 = smov [#allocation5]  }
  0x58   : > { %p1204_p9 = scmp.ne.s32.totalorder %s182_s11, %s1203_s29  ;;  %s1208_s26 = sshll.u32 %s1298_s22, 4  ;;  %s1209_s26 = int_to_ptr.vmem [resolvable:$false] %s1208_s26 }
  0x59   : > { %s1210_s8 = scalar_lea.vmem %s1209_s26, 128  ;;  %p1211_p1 = scmp.lt.s32.totalorder %s182_s11, %s1209_s26 }
  0x5a   : > { %p1206_p2 = pnand %p1204_p9, %p1160_p0  ;;  %p1212_p12 = scmp.lt.s32.totalorder %s1210_s8, %s1203_s29 }
  0x5c   : > { %p1207_p5 = pneg %p1206_p2  ;;  %p1213_p6 = por %p1212_p12, %p1211_p1 }
  0x5e   : > { %p1214_p8 = pnand %p1213_p6, %p1207_p5 }
  0x60   : > { %1217 = shalt.err (!%p1214_p8)
}
  0x61   : > { %1072 = dma.hbm_to_vmem [thread:$0]  (!%p1431_p11), %s1440_s7, 64, %s182_s11, %s171_s23  }
  0x62   : > { %p1704_p4 = scmp.ne.s32.totalorder %s1699_s20, 0 }
  0x63   : > { %s1491_s9 = sand.u32 (!%p1704_p4), 1, %s1284_s13   ;;  %p1705_p0 = scmp.ne.s32.totalorder (!%p1704_p4), %s1697_s18, 0 }
  0x64   : > { %190 = sbr.rel (%p1704_p4) target bundleno = 316 (0x13c), region = 32  ;;  %s1026_s10 = sshll.u32 (!%p1704_p4), %s1491_s9, 2 }
  0x65   : > { %s193_s30 = scalar_lea.sflag (!%p1704_p4), [#allocation3], %s1491_s9  ;;  %s196_s25 = scalar_lea.vmem (!%p1704_p4), [#allocation2], %s1026_s10 }
  0x6b   : > { %1263 = dma.done.wait (%p1705_p0), %s193_s30, 64  }
  0x6c   : > { %1265 = vsyncadd (%p1705_p0), %s193_s30, 4294967232  ;;  %s201_s4 = sand.u32 1, %s1347_s16   ;;  %s205_s20 = scalar_lea.vmem [#allocation5], %s1026_s10 }
  0x6d   : > { %s202_s7 = scalar_lea.sflag [#allocation6], %s201_s4 }
  0x6e   : > { %1267 = dma.done.wait (%p1705_p0), %s202_s7, 64  }
  0x6f   : > { %1269 = vsyncadd (%p1705_p0), %s202_s7, 4294967232  ;;  %p1706_p12 = scmp.eq.s32.totalorder %s1347_s16, 0 }
  0x71   : > { %1271 = dma.done.wait (%p1706_p12), [#allocation6], 3840   ;;  %p1707_p11 = pmov %p1706_p12 }
  0x72   : > { %v238_v0 = vlaneseq  ;;  %v236_v6 = vld [vmem:[%s196_s25] sm:$0xf]  ;;  %v237_v7 = vld [vmem:[#allocation7] sm:$0xff]  ;;  %v245_v9 = vld [vmem:[#allocation7 + $0x8] sm:$0xff]  ;;  %s1041_s18 = sshll.u32 %s1347_s16, 4  ;;  %s235_s11 = scalar_lea.vmem [#allocation8], %s1491_s9 }
  0x73   : > { %1273 = vsyncadd (%p1707_p11), [#allocation6], 4294963456  ;;  %v243_v12 = vld [vmem:[#allocation7 + $0x20] sm:$0xff]  ;;  %v252_v13 = vld [vmem:[#allocation7 + $0x10] sm:$0xff]  ;;  %s919_s23 = sshll.u32 %s235_s11, 4  ;;  %s1645_s5 = scalar_lea.hbm %s1692_s3, %s1041_s18  ;;  %s1647_s23 = int_to_ptr.vmem [resolvable:$true] %s919_s23 }
  0x74   : > { %v239_v1 = vshrl.u32 %v238_v0, 7  ;;  %v259_v17 = vld [vmem:[#allocation7 + $0x18] sm:$0xff]  ;;  %v267_v30 = vld [vmem:[#allocation7 + $0x28] sm:$0xff]  ;;  %v275_v31 = vld [vmem:[#allocation7 + $0x30] sm:$0xff]  ;;  %s907_s6 = scalar_lea.sflag [#allocation4], %s1491_s9  ;;  %s1218_s29 = scalar_lea.vmem %s1647_s23, 16 }
  0x75   : > { %v382_v22 = vld [vmem:[%s205_s20] sm:$0xf]  ;;  %v273_v39 = vld [vmem:[#allocation7 + $0x68] sm:$0xff]  ;;  %v289_v46 = vld [vmem:[#allocation7 + $0x40] sm:$0xff]  ;;  %p1219_p10 = scmp.ne.s32.totalorder %s1647_s23, %s1218_s29  ;;  %p1710_p13 = scmp.ne.s32.totalorder %s1702_s21, 0 }
  0x76   : > { %v1508_v2 = vsub.s32 0, %v239_v1  ;;  %v1510_v3 = vsub.s32 1, %v239_v1  ;;  %v1512_v4 = vsub.s32 2, %v239_v1  ;;  %v1514_v5 = vsub.s32 3, %v239_v1  ;;  %v282_v40 = vld [vmem:[#allocation7 + $0x38] sm:$0xff]  ;;  %v296_v53 = vld [vmem:[#allocation7 + $0x48] sm:$0xff] }
  0x77   : > { %v1523_v32 = vsub.s32 4, %v239_v1  ;;  %v1529_v41 = vsub.s32 5, %v239_v1  ;;  %v1532_v47 = vsub.s32 6, %v239_v1  ;;  %v1535_v54 = vsub.s32 7, %v239_v1  ;;  %v303_v59 = vld [vmem:[#allocation7 + $0x50] sm:$0xff]  ;;  %v310_v0 = vld [vmem:[#allocation7 + $0x58] sm:$0xff]  ;;  %p1220_p3 = pnand %p1219_p10, %p1710_p13 }
  0x78   : > { %v241_v8 = vrot.slane %v236_v6, %v1508_v2  ;;  %v249_v10 = vrot.slane %v236_v6, %v1510_v3  ;;  %v256_v11 = vrot.slane %v236_v6, %v1512_v4  ;;  %v263_v16 = vrot.slane %v236_v6, %v1514_v5  ;;  %s1305_s16 = smov [#allocation8]  }
  0x79   : > { %v386_v24 = vrot.slane %v382_v22, %v1508_v2  ;;  %v392_v25 = vrot.slane %v382_v22, %v1510_v3  ;;  %v398_v29 = vrot.slane %v382_v22, %v1512_v4  ;;  %v404_v34 = vrot.slane %v382_v22, %v1514_v5  ;;  %p1221_p7 = pneg %p1220_p3  ;;  %s1222_s22 = sshll.u32 %s1305_s16, 4  ;;  %s1223_s22 = int_to_ptr.vmem [resolvable:$false] %s1222_s22 }
  0x7a   : > { %v242_v14 = vmul.f32 %v241_v8, %v237_v7  ;;  %v250_v15 = vmul.f32 %v249_v10, %v245_v9  ;;  %v257_v19 = vmul.f32 %v256_v11, %v252_v13  ;;  %v264_v21 = vmul.f32 %v263_v16, %v259_v17  ;;  %s1224_s26 = scalar_lea.vmem %s1223_s22, 32  ;;  %p1225_p9 = scmp.lt.s32.totalorder %s1647_s23, %s1223_s22 }
  0x7b   : > { %v387_v27 = vmul.f32 %v386_v24, %v237_v7  ;;  %v393_v33 = vmul.f32 %v392_v25, %v245_v9  ;;  %v399_v45 = vmul.f32 %v398_v29, %v252_v13  ;;  %v405_v48 = vmul.f32 %v404_v34, %v259_v17  ;;  %v317_v9 = vld [vmem:[#allocation7 + $0x60] sm:$0xff]  ;;  %p1226_p2 = scmp.lt.s32.totalorder %s1224_s26, %s1218_s29 }
  0x7c   : > { %v244_v18 = vadd.f32 %v243_v12, %v242_v14 }
  0x7d   : > { %v388_v38 = vadd.f32 %v387_v27, %v243_v12  ;;  %v325_v27 = vld [vmem:[#allocation7 + $0x70] sm:$0xff]  ;;  %p1227_p5 = por %p1226_p2, %p1225_p9 }
  0x7e   : > { %v251_v20 = vadd.f32 %v250_v15, %v244_v18 }
  0x7f   : > { %v394_v52 = vadd.f32 %v393_v33, %v388_v38  ;;  %p1228_p1 = pnand %p1227_p5, %p1221_p7 }
  0x80   : > { %v258_v23 = vadd.f32 %v257_v19, %v251_v20 }
  0x81   : > { %v400_v58 = vadd.f32 %v399_v45, %v394_v52 }
  0x82   : > { %v265_v26 = vadd.f32 %v264_v21, %v258_v23 }
  0x83   : > { %v406_v63 = vadd.f32 %v405_v48, %v400_v58  ;;  %v347_v48 = vld [vmem:[#allocation7 + $0x88] sm:$0xff] }
  0x84   : > { %v266_v28 = vmax.f32 %v265_v26, 0.0 }
  0x85   : > { %v407_v10 = vmax.f32 %v406_v63, 0.0 }
  0x86   : > { %v271_v35 = vrot.slane %v266_v28, %v1508_v2  ;;  %v279_v36 = vrot.slane %v266_v28, %v1510_v3  ;;  %v286_v37 = vrot.slane %v266_v28, %v1512_v4  ;;  %v293_v44 = vrot.slane %v266_v28, %v1514_v5 }
  0x87   : > { %v300_v51 = vrot.slane %v266_v28, %v1523_v32  ;;  %v307_v57 = vrot.slane %v266_v28, %v1529_v41  ;;  %v314_v62 = vrot.slane %v266_v28, %v1532_v47  ;;  %v321_v6 = vrot.slane %v266_v28, %v1535_v54  ;;  %v333_v28 = vld [vmem:[#allocation7 + $0x78] sm:$0xff] }
  0x88   : > { %v272_v42 = vmul.f32 %v271_v35, %v267_v30  ;;  %v280_v43 = vmul.f32 %v279_v36, %v275_v31  ;;  %v287_v50 = vmul.f32 %v286_v37, %v282_v40  ;;  %v294_v56 = vmul.f32 %v293_v44, %v289_v46  ;;  %v331_v36 = vld [vmem:[#allocation7 + $0xb0] sm:$0xff]  ;;  %v340_v37 = vld [vmem:[#allocation7 + $0x80] sm:$0xff] }
  0x89   : > { %v301_v61 = vmul.f32 %v300_v51, %v296_v53  ;;  %v308_v8 = vmul.f32 %v307_v57, %v303_v59  ;;  %v315_v11 = vmul.f32 %v314_v62, %v310_v0  ;;  %v411_v12 = vrot.slane %v407_v10, %v1508_v2 }
  0x8a   : > { %v274_v49 = vadd.f32 %v273_v39, %v272_v42  ;;  %v417_v13 = vrot.slane %v407_v10, %v1510_v3  ;;  %v322_v14 = vmul.f32 %v321_v6, %v317_v9  ;;  %v423_v18 = vrot.slane %v407_v10, %v1512_v4 }
  0x8b   : > { %v412_v16 = vmul.f32 %v411_v12, %v267_v30  ;;  %v429_v21 = vrot.slane %v407_v10, %v1514_v5  ;;  %v435_v26 = vrot.slane %v407_v10, %v1523_v32  ;;  %v441_v33 = vrot.slane %v407_v10, %v1529_v41 }
  0x8c   : > { %v281_v55 = vadd.f32 %v280_v43, %v274_v49  ;;  %v418_v17 = vmul.f32 %v417_v13, %v275_v31  ;;  %v424_v24 = vmul.f32 %v423_v18, %v282_v40  ;;  %v447_v42 = vrot.slane %v407_v10, %v1532_v47 }
  0x8d   : > { %v413_v20 = vadd.f32 %v412_v16, %v273_v39  ;;  %v430_v29 = vmul.f32 %v429_v21, %v289_v46  ;;  %v436_v40 = vmul.f32 %v435_v26, %v296_v53  ;;  %v442_v44 = vmul.f32 %v441_v33, %v303_v59  ;;  %v375_v21 = vld [vmem:[#allocation7 + $0xa8] sm:$0xff] }
  0x8e   : > { %v288_v60 = vadd.f32 %v287_v50, %v281_v55  ;;  %v453_v50 = vrot.slane %v407_v10, %v1535_v54  ;;  %v448_v55 = vmul.f32 %v447_v42, %v310_v0  ;;  %v368_v0 = vld [vmem:[#allocation7 + $0xa0] sm:$0xff] }
  0x8f   : > { %v419_v23 = vadd.f32 %v418_v17, %v413_v20 }
  0x90   : > { %v295_v7 = vadd.f32 %v294_v56, %v288_v60  ;;  %v354_v60 = vld [vmem:[#allocation7 + $0x90] sm:$0xff] }
  0x91   : > { %v425_v35 = vadd.f32 %v424_v24, %v419_v23 }
  0x92   : > { %v302_v1 = vadd.f32 %v301_v61, %v295_v7  ;;  %v454_v61 = vmul.f32 %v453_v50, %v317_v9  ;;  %v361_v7 = vld [vmem:[#allocation7 + $0x98] sm:$0xff]  ;;  %v514_v50 = vld [vmem:[#allocation7 + $0xc0] sm:$0xff] }
  0x93   : > { %v431_v49 = vadd.f32 %v430_v29, %v425_v35 }
  0x94   : > { %v309_v15 = vadd.f32 %v308_v8, %v302_v1 }
  0x95   : > { %v437_v52 = vadd.f32 %v436_v40, %v431_v49  ;;  %v508_v49 = vld [vmem:[#allocation7 + $0xb8] sm:$0xff] }
  0x96   : > { %v316_v19 = vadd.f32 %v315_v11, %v309_v15 }
  0x97   : > { %v443_v53 = vadd.f32 %v442_v44, %v437_v52 }
  0x98   : > { %v323_v22 = vadd.f32 %v322_v14, %v316_v19 }
  0x99   : > { %v449_v62 = vadd.f32 %v448_v55, %v443_v53 }
  0x9a   : > { %v324_v25 = vmax.f32 %v323_v22, 0.0 }
  0x9b   : > { %v455_v8 = vadd.f32 %v454_v61, %v449_v62 }
  0x9c   : > { %v329_v30 = vrot.slane %v324_v25, %v1508_v2  ;;  %v337_v31 = vrot.slane %v324_v25, %v1510_v3  ;;  %v344_v34 = vrot.slane %v324_v25, %v1512_v4  ;;  %v351_v43 = vrot.slane %v324_v25, %v1514_v5 }
  0x9d   : > { %v358_v57 = vrot.slane %v324_v25, %v1523_v32  ;;  %v365_v59 = vrot.slane %v324_v25, %v1529_v41  ;;  %v456_v1 = vmax.f32 %v455_v8, 0.0  ;;  %v372_v12 = vrot.slane %v324_v25, %v1532_v47 }
  0x9e   : > { %v330_v38 = vmul.f32 %v329_v30, %v325_v27  ;;  %v338_v39 = vmul.f32 %v337_v31, %v333_v28  ;;  %v345_v46 = vmul.f32 %v344_v34, %v340_v37  ;;  %v352_v56 = vmul.f32 %v351_v43, %v347_v48 }
  0x9f   : > { %v359_v6 = vmul.f32 %v358_v57, %v354_v60  ;;  %v366_v10 = vmul.f32 %v365_v59, %v361_v7  ;;  %v460_v13 = vrot.slane %v456_v1, %v1508_v2  ;;  %v466_v14 = vrot.slane %v456_v1, %v1510_v3 }
  0xa0   : > { %v332_v45 = vadd.f32 %v331_v36, %v330_v38  ;;  %v472_v15 = vrot.slane %v456_v1, %v1512_v4  ;;  %v478_v17 = vrot.slane %v456_v1, %v1514_v5  ;;  %v373_v19 = vmul.f32 %v372_v12, %v368_v0  ;;  %v555_v12 = vld [vmem:[#allocation7 + $0xe0] sm:$0xff] }
  0xa1   : > { %v461_v9 = vmul.f32 %v460_v13, %v325_v27  ;;  %v467_v16 = vmul.f32 %v466_v14, %v333_v28  ;;  %v379_v20 = vrot.slane %v324_v25, %v1535_v54  ;;  %v484_v24 = vrot.slane %v456_v1, %v1523_v32 }
  0xa2   : > { %v339_v51 = vadd.f32 %v338_v39, %v332_v45  ;;  %v473_v23 = vmul.f32 %v472_v15, %v340_v37  ;;  %v479_v29 = vmul.f32 %v478_v17, %v347_v48  ;;  %v490_v33 = vrot.slane %v456_v1, %v1529_v41 }
  0xa3   : > { %v462_v22 = vadd.f32 %v461_v9, %v331_v36  ;;  %v380_v31 = vmul.f32 %v379_v20, %v375_v21  ;;  %v485_v27 = vmul.f32 %v484_v24, %v354_v60  ;;  %v496_v28 = vrot.slane %v456_v1, %v1532_v47 }
  0xa4   : > { %v346_v58 = vadd.f32 %v345_v46, %v339_v51  ;;  %v491_v38 = vmul.f32 %v490_v33, %v361_v7  ;;  %v502_v39 = vrot.slane %v456_v1, %v1535_v54  ;;  %v521_v51 = vld [vmem:[#allocation7 + $0xc8] sm:$0xff] }
  0xa5   : > { %v468_v26 = vadd.f32 %v467_v16, %v462_v22  ;;  %v497_v36 = vmul.f32 %v496_v28, %v368_v0  ;;  %v562_v16 = vld [vmem:[#allocation7 + $0xe8] sm:$0xff] }
  0xa6   : > { %v353_v63 = vadd.f32 %v352_v56, %v346_v58  ;;  %v503_v42 = vmul.f32 %v502_v39, %v375_v21 }
  0xa7   : > { %v474_v34 = vadd.f32 %v473_v23, %v468_v26 }
  0xa8   : > { %v360_v11 = vadd.f32 %v359_v6, %v353_v63 }
  0xa9   : > { %v480_v35 = vadd.f32 %v479_v29, %v474_v34 }
  0xaa   : > { %v367_v18 = vadd.f32 %v366_v10, %v360_v11  ;;  %v533_v11 = vld [vmem:[#allocation7 + $0xd0] sm:$0xff]  ;;  %v548_v10 = vld [vmem:[#allocation7 + $0xd8] sm:$0xff] }
  0xab   : > { %v486_v40 = vadd.f32 %v485_v27, %v480_v35 }
  0xac   : > { %v374_v30 = vadd.f32 %v373_v19, %v367_v18 }
  0xad   : > { %v492_v37 = vadd.f32 %v491_v38, %v486_v40  ;;  %v1299_v38 = vmov 683565275  }
  0xae   : > { %v381_v25 = vadd.f32 %v380_v31, %v374_v30 }
  0xaf   : > { %v498_v43 = vadd.f32 %v497_v36, %v492_v37  ;;  %v1301_v36 = vmov 2131351028  }
  0xb0   : > { %v506_v32 = vsub.f32 3.1415927, %v381_v25 }
  0xb1   : > { %v504_v44 = vadd.f32 %v503_v42, %v498_v43  ;;  %v1302_v42 = vmov 2102212464   ;;  %v1303_v43 = vmov 920167782  }
  0xb2   : > { %v535_v45 = vrot.slane %v506_v32, 1  ;;  %v563_v41 = vrot.slane %v506_v32, 5 }
  0xb3   : > { %v505_v46 = vsub.f32 %v381_v25, %v504_v44  ;;  %v507_v48 = vsub.f32 3.1415927, %v504_v44  ;;  %v1300_v25 = vmov 2475754826  }
  0xb4   : > { %v537_v55 = vmul.f32 %v535_v45, %v506_v32  ;;  %v565_v57 = vmul.f32 %v563_v41, %v506_v32 }
  0xb5   : > { %v512_v47 = vrot.slane %v505_v46, %v1508_v2  ;;  %v518_v52 = vrot.slane %v505_v46, %v1510_v3  ;;  %v525_v54 = vrot.slane %v505_v46, %v1512_v4  ;;  %v539_v56 = vrot.slane %v507_v48, 1 }
  0xb6   : > { %v566_v58 = vrot.slane %v507_v48, 5  ;;  %v531_v59 = vrot.slane %v505_v46, %v1514_v5 }
  0xb7   : > { %v513_v60 = vmul.f32 %v512_v47, %v508_v49  ;;  %v519_v53 = vmul.f32 %v518_v52, %v514_v50  ;;  %v526_v61 = vmul.f32 %v525_v54, %v521_v51  ;;  %v541_v62 = vmul.f32 %v539_v56, %v507_v48 }
  0xb8   : > { %v568_v63 = vmul.f32 %v566_v58, %v507_v48  ;;  %v1304_v47 = vmov 1326507024  }
  0xb9   : > { %v520_v6 = vadd.f32 %v519_v53, %v513_v60  ;;  %v542_v7 = vsub.f32 %v537_v55, %v541_v62 }
  0xba   : > { %v569_v8 = vsub.f32 %v565_v57, %v568_v63 }
  0xbb   : > { %v527_v1 = vadd.f32 %v526_v61, %v520_v6  ;;  %v546_v0 = vrot.slane %v542_v7, %v1508_v2  ;;  %v552_v13 = vrot.slane %v542_v7, %v1510_v3  ;;  %v559_v14 = vrot.slane %v542_v7, %v1512_v4 }
  0xbc   : > { %v573_v15 = vrot.slane %v569_v8, %v1514_v5 }
  0xbd   : > { %v1572_v9 = vadd.f32 %v531_v59, %v527_v1  ;;  %v547_v17 = vmul.f32 %v546_v0, %v533_v11  ;;  %v553_v18 = vmul.f32 %v552_v13, %v548_v10  ;;  %v560_v19 = vmul.f32 %v559_v14, %v555_v12 }
  0xbe   : > { %v574_v22 = vmul.f32 %v573_v15, %v562_v16 }
  0xbf   : > { %v579_v20 = vand.u32 2139095040, %v1572_v9  ;;  %v554_v21 = vadd.f32 %v553_v18, %v547_v17  ;;  %v576_v23 = vand.u32 2147483647, %v1572_v9  ;;  %vm578_vm13 = vcmp.lt.s32.totalorder %v1572_v9, 0 }
  0xc1   : > { %v580_v24 = vshrl.u32 %v579_v20, 23  ;;  %v561_v2 = vadd.f32 %v560_v19, %v554_v21  ;;  %v583_v4 = vand.u32 8388607, %v576_v23  ;;  %vm1619_vm15 = vcmp.le.f32.partialorder %v576_v23, 0.7853982 }
  0xc3   : > { %v1029_v26 = vadd.s32 4294967169, %v580_v24  ;;  %v1576_v3 = vadd.f32 %v574_v22, %v561_v2  ;;  %v584_v33 = vor.u32 8388608, %v583_v4 }
  0xc5   : > { %v586_v5 = vadd.s32 1, %v1029_v26  ;;  %v682_v29 = vand.u32 2139095040, %v1576_v3  ;;  %v624_v45 = vshll.u32 %v584_v33, 8  ;;  %v679_v41 = vand.u32 2147483647, %v1576_v3 }
  0xc7   : > { %vm587_vm0 = vcmp.gt.s32.totalorder %v586_v5, 0  ;;  %v683_v31 = vshrl.u32 %v682_v29, 23  ;;  %v686_v11 = vand.u32 8388607, %v679_v41 }
  0xc8   : > { %v588_v30 = vsel %vm587_vm0, %v586_v5, 0  ;;  %vm681_vm0 = vcmp.lt.s32.totalorder %v1576_v3, 0 }
  0xc9   : > { %v590_v34 = vand.u32 31, %v588_v30  ;;  %v589_v27 = vshrl.u32 %v588_v30, 5  ;;  %v1033_v28 = vadd.s32 4294967169, %v683_v31  ;;  %v687_v21 = vor.u32 8388608, %v686_v11 }
  0xcb   : > { %v591_v35 = vsub.s32 32, %v590_v34  ;;  %v593_v39 = vshll.u32 %v1299_v38, %v590_v34  ;;  %v596_v40 = vshll.u32 %v1300_v25, %v590_v34  ;;  %v599_v37 = vshll.u32 %v1301_v36, %v590_v34 }
  0xcc   : > { %v602_v32 = vshll.u32 %v1302_v42, %v590_v34  ;;  %v605_v44 = vshll.u32 %v1303_v43, %v590_v34  ;;  %vm608_vm1 = vcmp.lt.s32.totalorder %v589_v27, 1  ;;  %vm611_vm2 = vcmp.lt.s32.totalorder %v589_v27, 4 }
  0xcd   : > { %v592_v46 = vshrl.u32 %v1299_v38, %v591_v35  ;;  %v594_v48 = vshrl.u32 %v1300_v25, %v591_v35  ;;  %v597_v49 = vshrl.u32 %v1301_v36, %v591_v35  ;;  %v600_v50 = vshrl.u32 %v1302_v42, %v591_v35 }
  0xce   : > { %v603_v51 = vshrl.u32 %v1303_v43, %v591_v35  ;;  %v606_v52 = vshrl.u32 %v1304_v47, %v591_v35  ;;  %v689_v57 = vadd.s32 1, %v1033_v28  ;;  %vm609_vm3 = vcmp.lt.s32.totalorder %v589_v27, 2 }
  0xcf   : > { %v595_v54 = vor.u32 %v594_v48, %v593_v39  ;;  %v598_v55 = vor.u32 %v597_v49, %v596_v40  ;;  %v601_v56 = vor.u32 %v600_v50, %v599_v37  ;;  %vm610_vm4 = vcmp.lt.s32.totalorder %v589_v27, 3 }
  0xd0   : > { %v604_v58 = vor.u32 %v603_v51, %v602_v32  ;;  %v607_v60 = vor.u32 %v606_v52, %v605_v44  ;;  %vm690_vm5 = vcmp.gt.s32.totalorder %v689_v57, 0 }
  0xd1   : > { %v612_v53 = vsel %vm608_vm1, %v592_v46, %v595_v54  ;;  %v613_v61 = vsel %vm611_vm2, %v601_v56, 2102212464  ;;  %v616_v62 = vsel %vm608_vm1, %v595_v54, %v598_v55  ;;  %v620_v63 = vsel %vm608_vm1, %v598_v55, %v601_v56 }
  0xd2   : > { %v614_v6 = vsel %vm610_vm4, %v598_v55, %v613_v61  ;;  %v617_v59 = vsel %vm611_vm2, %v604_v58, 920167782  ;;  %v621_v7 = vsel %vm611_vm2, %v607_v60, 1326507024  ;;  %v691_v10 = vsel %vm690_vm5, %v689_v57, 0 }
  0xd3   : > { %v618_v8 = vsel %vm610_vm4, %v601_v56, %v617_v59  ;;  %v622_v1 = vsel %vm610_vm4, %v604_v58, %v621_v7  ;;  %v615_v12 = vsel %vm609_vm3, %v612_v53, %v614_v6  ;;  %v692_v14 = vshrl.u32 %v691_v10, 5 }
  0xd4   : > { %v619_v0 = vsel %vm609_vm3, %v616_v62, %v618_v8  ;;  %v623_v13 = vsel %vm609_vm3, %v620_v63, %v622_v1  ;;  %v693_v19 = vand.u32 31, %v691_v10  ;;  %v631_v20 = vmul.u32 %v624_v45, %v615_v12 }
  0xd5   : > { %v1587_v15 = vmul.u32.u64.low %v624_v45, %v623_v13  ;;  %v1588_v16 = vmul.u32.u64.high %v624_v45, %v623_v13, %v1587_v15  ;;  %v1590_v17 = vmul.u32.u64.low %v624_v45, %v619_v0  ;;  %v1591_v18 = vmul.u32.u64.high %v624_v45, %v619_v0, %v1590_v17 }
  0xd6   : > { %vm711_vm6 = vcmp.lt.s32.totalorder %v692_v14, 1  ;;  %v694_v22 = vsub.s32 32, %v693_v19  ;;  %v696_v24 = vshll.u32 %v1299_v38, %v693_v19  ;;  %v699_v2 = vshll.u32 %v1300_v25, %v693_v19 }
  0xd7   : > { %v702_v26 = vshll.u32 %v1301_v36, %v693_v19  ;;  %vm633_vm7 = vc.u32 %v1588_v16, %v1590_v17  ;;  %v634_v4 = vadd.s32 1, %v1591_v18  ;;  %v705_v5 = vshll.u32 %v1302_v42, %v693_v19 }
  0xd8   : > { %vm714_vm8 = vcmp.lt.s32.totalorder %v692_v14, 4  ;;  %v695_v29 = vshrl.u32 %v1299_v38, %v694_v22  ;;  %v697_v33 = vshrl.u32 %v1300_v25, %v694_v22  ;;  %v700_v30 = vshrl.u32 %v1301_v36, %v694_v22 }
  0xd9   : > { %v703_v31 = vshrl.u32 %v1302_v42, %v694_v22  ;;  %v635_v34 = vsel %vm633_vm7, %v634_v4, %v1591_v18  ;;  %v706_v27 = vshrl.u32 %v1303_v43, %v694_v22  ;;  %v708_v28 = vshll.u32 %v1303_v43, %v693_v19 }
  0xda   : > { %v709_v35 = vshrl.u32 %v1304_v47, %v694_v22  ;;  %v636_v39 = vadd.s32 %v635_v34, %v631_v20  ;;  %v698_v40 = vor.u32 %v697_v33, %v696_v24  ;;  %v701_v37 = vor.u32 %v700_v30, %v699_v2 }
  0xdb   : > { %v704_v32 = vor.u32 %v703_v31, %v702_v26  ;;  %v707_v44 = vor.u32 %v706_v27, %v705_v5  ;;  %vm713_vm9 = vcmp.lt.s32.totalorder %v692_v14, 3  ;;  %v727_v46 = vshll.u32 %v687_v21, 8 }
  0xdc   : > { %v710_v45 = vor.u32 %v709_v35, %v708_v28  ;;  %v637_v48 = vadd.s32 536870912, %v636_v39  ;;  %vm712_vm10 = vcmp.lt.s32.totalorder %v692_v14, 2  ;;  %v719_v25 = vsel %vm711_vm6, %v698_v40, %v701_v37 }
  0xdd   : > { %v716_v38 = vsel %vm714_vm8, %v704_v32, 2102212464  ;;  %v715_v36 = vsel %vm711_vm6, %v695_v29, %v698_v40  ;;  %v720_v42 = vsel %vm714_vm8, %v707_v44, 920167782  ;;  %v723_v43 = vsel %vm711_vm6, %v701_v37, %v704_v32 }
  0xde   : > { %v724_v49 = vsel %vm714_vm8, %v710_v45, 1326507024  ;;  %v1602_v50 = vshrl.u32 %v637_v48, 30  ;;  %v717_v51 = vsel %vm713_vm9, %v701_v37, %v716_v38  ;;  %v721_v47 = vsel %vm713_vm9, %v704_v32, %v720_v42 }
  0xdf   : > { %v725_v52 = vsel %vm713_vm9, %v707_v44, %v724_v49  ;;  %v722_v54 = vsel %vm712_vm10, %v719_v25, %v721_v47  ;;  %v718_v60 = vsel %vm712_vm10, %v715_v36, %v717_v51  ;;  %v632_v0 = vadd.s32 %v1590_v17, %v1588_v16 }
  0xe0   : > { %v726_v55 = vsel %vm712_vm10, %v723_v43, %v725_v52  ;;  %v639_v56 = vshll.u32 %v1602_v50, 30  ;;  %v1608_v53 = vmul.u32.u64.low %v727_v46, %v722_v54  ;;  %v1609_v61 = vmul.u32.u64.high %v727_v46, %v722_v54, %v1608_v53 }
  0xe1   : > { %v1605_v57 = vmul.u32.u64.low %v727_v46, %v726_v55  ;;  %v1606_v58 = vmul.u32.u64.high %v727_v46, %v726_v55, %v1605_v57  ;;  %v734_v6 = vmul.u32 %v727_v46, %v718_v60  ;;  %v662_v36 = vsub.s32 4, %v1602_v50 }
  0xe2   : > { %v640_v62 = vsub.s32 %v636_v39, %v639_v56  ;;  %v737_v59 = vadd.s32 1, %v1609_v61  ;;  %vm680_vm1 = vcmp.le.f32.partialorder %v679_v41, 0.7853982  ;;  %vm668_vm5 = vweird.f32 %v1572_v9 }
  0xe3   : > { %vm736_vm11 = vc.u32 %v1606_v58, %v1608_v53  ;;  %v735_v27 = vadd.s32 %v1608_v53, %v1606_v58  ;;  %v663_v51 = vsel %vm578_vm13, %v662_v36, %v1602_v50 }
  0xe4   : > { %v642_v63 = vsub.s32 0, %v640_v62  ;;  %v738_v8 = vsel %vm736_vm11, %v737_v59, %v1609_v61  ;;  %v665_v54 = vsel %vm1619_vm15, 0, %v663_v51 }
  0xe5   : > { %v739_v11 = vadd.s32 %v738_v8, %v734_v6  ;;  %v669_v53 = vand.u32 3, %v665_v54 }
  0xe6   : > { %v1030_v7 = vmin.u32 %v642_v63, %v640_v62 }
  0xe7   : > { %v740_v12 = vadd.s32 536870912, %v739_v11  ;;  %vm671_vm2 = vcmp.eq.s32.totalorder %v669_v53, 0  ;;  %vm674_vm3 = vcmp.eq.s32.totalorder %v669_v53, 2  ;;  %vm670_vm4 = vcmp.lt.s32.totalorder %v669_v53, 2 }
  0xe8   : > { %v644_v1 = vclz %v1030_v7 }
  0xe9   : > { %v741_v13 = vshrl.u32 %v740_v12, 30 }
  0xea   : > { %v1031_v10 = vadd.s32 4294967294, %v644_v1 }
  0xeb   : > { %v742_v20 = vshll.u32 %v741_v13, 30  ;;  %v765_v43 = vsub.s32 4, %v741_v13 }
  0xec   : > { %vm1032_vm12 = vcmp.lt.s32.totalorder %v1031_v10, 0 }
  0xed   : > { %v647_v14 = vsel %vm1032_vm12, 0, %v1031_v10  ;;  %v743_v24 = vsub.s32 %v739_v11, %v742_v20  ;;  %v766_v52 = vsel %vm681_vm0, %v765_v43, %v741_v13  ;;  %vm771_vm12 = vweird.f32 %v1576_v3 }
  0xee   : > { %v648_v15 = vsub.s32 32, %v647_v14  ;;  %v649_v18 = vshll.u32 %v640_v62, %v647_v14  ;;  %v652_v19 = vsub.s32 4294967266, %v647_v14  ;;  %v768_v57 = vsel %vm680_vm1, 0, %v766_v52 }
  0xef   : > { %v745_v4 = vsub.s32 0, %v743_v24  ;;  %v875_v50 = vadd.s32 3, %v768_v57  ;;  %v772_v41 = vand.u32 3, %v768_v57 }
  0xf0   : > { %v650_v21 = vshrl.u32 %v632_v0, %v648_v15  ;;  %v653_v22 = vadd.s32 127, %v652_v19 }
  0xf1   : > { %v1034_v33 = vmin.u32 %v745_v4, %v743_v24  ;;  %v876_v63 = vand.u32 3, %v875_v50  ;;  %vm777_vm6 = vcmp.eq.s32.totalorder %v772_v41, 2  ;;  %vm774_vm8 = vcmp.eq.s32.totalorder %v772_v41, 0 }
  0xf2   : > { %v651_v2 = vor.u32 %v650_v21, %v649_v18  ;;  %v654_v26 = vshll.u32 %v653_v22, 23  ;;  %vm773_vm10 = vcmp.lt.s32.totalorder %v772_v41, 2 }
  0xf3   : > { %v747_v31 = vclz %v1034_v33  ;;  %vm881_vm7 = vcmp.eq.s32.totalorder %v876_v63, 2  ;;  %vm878_vm9 = vcmp.eq.s32.totalorder %v876_v63, 0  ;;  %vm877_vm11 = vcmp.lt.s32.totalorder %v876_v63, 2 }
  0xf4   : > { %v655_v5 = vor.u32 4788187, %v654_v26  ;;  %v658_v29 = vcvt.s32.f32 %v651_v2 }
  0xf5   : > { %v1035_v16 = vadd.s32 4294967294, %v747_v31 }
  0xf6   : > { %v656_v30 = vand.u32 2147483647, %v655_v5 }
  0xf7   : > { %vm1036_vm14 = vcmp.lt.s32.totalorder %v1035_v16, 0 }
  0xf8   : > { %v659_v34 = vmul.f32 %v658_v29, %v656_v30  ;;  %v750_v35 = vsel %vm1036_vm14, 0, %v1035_v16 }
  0xf9   : > { %v751_v40 = vsub.s32 32, %v750_v35  ;;  %v752_v37 = vshll.u32 %v743_v24, %v750_v35  ;;  %v755_v32 = vsub.s32 4294967266, %v750_v35 }
  0xfa   : > { %v660_v17 = vxor.u32 2147483648, %v659_v34 }
  0xfb   : > { %v753_v44 = vshrl.u32 %v735_v27, %v751_v40  ;;  %v756_v45 = vadd.s32 127, %v755_v32 }
  0xfc   : > { %v661_v39 = vsel %vm578_vm13, %v660_v17, %v659_v34 }
  0xfd   : > { %v664_v46 = vsel %vm1619_vm15, %v1572_v9, %v661_v39  ;;  %v754_v48 = vor.u32 %v753_v44, %v752_v37  ;;  %v757_v38 = vshll.u32 %v756_v45, 23 }
  0xfe   : > { %1122 = vcosq.f32 %v664_v46 }
  0xff   : > { %v758_v23 = vor.u32 4788187, %v757_v38  ;;  %v761_v25 = vcvt.s32.f32 %v754_v48  ;;  %1124 = vsinq.f32 %v664_v46 }
 0x101   : > { %v759_v42 = vand.u32 2147483647, %v758_v23 }
 0x103   : > { %v762_v49 = vmul.f32 %v761_v25, %v759_v42 }
 0x105   : > { %v763_v47 = vxor.u32 2147483648, %v762_v49 }
 0x107   : > { %v764_v55 = vsel %vm681_vm0, %v763_v47, %v762_v49 }
 0x108   : > { %v767_v56 = vsel %vm680_vm1, %v1576_v3, %v764_v55  ;;  %v1123_v58 = vpop.eup %1122 }
 0x109   : > { %1126 = vcosq.f32 %v767_v56  ;;  %v1125_v60 = vpop.eup %1124  ;;  %v675_v62 = vxor.u32 2147483648, %v1123_v58 }
 0x10a   : > { %1128 = vsinq.f32 %v767_v56  ;;  %v672_v61 = vxor.u32 2147483648, %v1125_v60 }
 0x10b   : > { %v676_v59 = vsel %vm674_vm3, %v675_v62, %v1125_v60 }
 0x10c   : > { %v673_v6 = vsel %vm671_vm2, %v1123_v58, %v672_v61 }
 0x10d   : > { %v677_v1 = vsel %vm670_vm4, %v673_v6, %v676_v59 }
 0x10e   : > { %v678_v13 = vsel %vm668_vm5, nan, %v677_v1 }
 0x113   : > { %v1127_v7 = vpop.eup %1126 }
 0x114   : > { %v1129_v8 = vpop.eup %1128  ;;  %v778_v11 = vxor.u32 2147483648, %v1127_v7 }
 0x115   : > { %v775_v10 = vxor.u32 2147483648, %v1129_v8 }
 0x116   : > { %v779_v12 = vsel %vm777_vm6, %v778_v11, %v1129_v8  ;;  %v883_v0 = vsel %vm881_vm7, %v778_v11, %v1129_v8 }
 0x117   : > { %v776_v14 = vsel %vm774_vm8, %v1127_v7, %v775_v10  ;;  %v880_v15 = vsel %vm878_vm9, %v1127_v7, %v775_v10 }
 0x118   : > { %v780_v18 = vsel %vm773_vm10, %v776_v14, %v779_v12  ;;  %v884_v19 = vsel %vm877_vm11, %v880_v15, %v883_v0 }
 0x119   : > { %v781_v9 = vsel %vm771_vm12, nan, %v780_v18  ;;  %v885_v20 = vsel %vm771_vm12, nan, %v884_v19 }
 0x11a   : > { %v886_v21 = vmul.f32 %v781_v9, %v678_v13  ;;  %v894_v22 = vmul.f32 %v885_v20, %v678_v13 }
 0x11c   : > { %v887_v24 = vrot.slane %v886_v21, 4  ;;  %v895_v2 = vrot.slane %v894_v22, 4 }
 0x11e   : > { %v888_v26 = vadd.f32 %v887_v24, %v886_v21  ;;  %v896_v4 = vadd.f32 %v895_v2, %v894_v22 }
 0x120   : > { %v889_v5 = vrot.slane %v888_v26, 2  ;;  %v897_v29 = vrot.slane %v896_v4, 2 }
 0x122   : > { %v890_v3 = vadd.f32 %v889_v5, %v888_v26  ;;  %v898_v33 = vadd.f32 %v897_v29, %v896_v4 }
 0x124   : > { %v891_v30 = vrot.slane %v890_v3, 1  ;;  %v899_v31 = vrot.slane %v898_v33, 1 }
 0x126   : > { %v892_v34 = vadd.f32 %v891_v30, %v890_v3  ;;  %v900_v16 = vadd.f32 %v899_v31, %v898_v33 }
 0x128   : > { %v893_v17 = vmul.f32 0.125, %v892_v34  ;;  %v901_v27 = vmul.f32 0.125, %v900_v16 }
 0x12a   : > { %v902_v28 = vmul.f32 %v893_v17, %v893_v17  ;;  %v903_v35 = vmul.f32 %v901_v27, %v901_v27 }
 0x12c   : > { %v904_v39 = vadd.f32 %v903_v35, %v902_v28 }
 0x12e   : > { %905 = vst [vmem:[%s235_s11] sm:$0x1] %v904_v39 }
 0x12f   : > { %1231 = shalt.err (!%p1228_p1)
}
 0x130   : > { %s1232_s8 = scalar_lea.hbm %s1645_s5, 16  ;;  %s1236_s30 = scalar_lea.hbm %s1692_s3, 32 }
 0x131   : > { %p1233_p6 = scmp.ne.s32.totalorder %s1645_s5, %s1232_s8  ;;  %p1237_p0 = scmp.lt.u32.totalorder %s1645_s5, %s1692_s3 }
 0x132   : > { %p1238_p12 = scmp.lt.u32.totalorder %s1236_s30, %s1232_s8  ;;  %p1240_p10 = scmp.lt.u32.totalorder %s1232_s8, %s1645_s5 }
 0x133   : > { %p1234_p8 = pnand %p1233_p6, %p1710_p13 }
 0x134   : > { %p1239_p11 = por %p1238_p12, %p1237_p0 }
 0x135   : > { %p1235_p4 = pneg %p1234_p8 }
 0x136   : > { %p1241_p3 = por %p1240_p10, %p1239_p11 }
 0x138   : > { %p1242_p7 = pnand %p1241_p3, %p1235_p4 }
 0x13a   : > { %1245 = shalt.err (!%p1242_p7)
}
 0x13b   : > { %1060 = dma.vmem_to_hbm [thread:$0]  (%p1710_p13), %s1647_s23, 16, %s1645_s5, %s907_s6  }
 0x13c PF: > { %s931_s7 = sand.u32 1, %s1280_s12   ;;  %p1711_p9 = scmp.ne.s32.totalorder %s1698_s19, 0 }
 0x13d   : > { %p1712_p2 = scmp.ge.s32.totalorder %s1292_s15, 2  ;;  %s932_s20 = scalar_lea.sflag [#allocation4], %s931_s7 }
 0x13f   : > { %p1074_p5 = pnand %p1712_p2, %p1711_p9 }
 0x141   : > { %1275 = dma.done.wait (!%p1074_p5), %s932_s20, 16  }
 0x142   : > { %1277 = vsyncadd (!%p1074_p5), %s932_s20, 4294967280  ;;  %p19_p1 = scmp.ge.s32.totalorder %s1382_s24, 4   ;;  %s1713_s12 = smov %s1284_s13 }
 0x143   : > { %s1714_s13 = smov %s1288_s14  ;;  %s1715_s14 = smov %s1413_s17 }
 0x144   : > { %s1716_s15 = smov %s1382_s24  ;;  %21 = sbr.rel (!%p19_p1) target bundleno = 7 (0x7), region = 94 }
 0x14b   :  { %936 = vsyncpa [#allocation3], 1 }
 0x14c   :  { %938 = vsyncpa [#allocation3 + $0x1], 1 }
 0x14d   :  { %939 = vsyncpa [#allocation6], 1 }
 0x14e   :  { %941 = vsyncpa [#allocation6 + $0x1], 1 }
 0x14f   :  { %942 = vsyncpa [#allocation4], 1 }
 0x150   :  { %944 = vsyncpa [#allocation4 + $0x1], 1 }

</bundles_post_ra>
